<compile_context>
chip_gen: v6e
topology: v6e:2x2x1
jax: 0.10.0
libtpu: 0.0.40
codegen_flags: <defaults>
</compile_context>

<pallas_src>
import jax
import jax.numpy as jnp
from jax import lax
from jax.experimental import pallas as pl
from jax.experimental.pallas import tpu as pltpu
import numpy as np

# TODO(synk): len(classes) comes from os.listdir of the dataset dir; fixed to 10 here.
NUM_CLASSES = 10
CIN = 256
COUT = 256
K = 2            # conv kernel size
POOL = 2         # max-pool size / stride
HIN = 6          # AlexNet feature map is 256 x 6 x 6
HID = 32         # fc1 width
OUT_PAD = 128    # lane-dense padded logit width
CPOS = 4         # conv output rows/cols actually consumed by the 2x2 pool


def _round_up(v, m):
    return (v + m - 1) // m * m


def cnn_transfer_kernel(x_ref, wconv_ref, bconv_ref,
                        wfc1_ref, bfc1_ref, wfc2_ref, bfc2_ref, out_ref):
    """Fused conv(K-concat matmul) + ReLU + maxpool + fc1 + ReLU + fc2.

    x_ref     : (TN, 6, 6, 256) bf16   NHWC, channels in lanes
    wconv_ref : (1024, 256)     bf16   row = (ky*2+kx)*256 + cin
    bconv_ref : (1, 256)        f32
    wfc1_ref  : (1024, 32)      bf16   row = (ph*2+pw)*256 + cout
    bfc1_ref  : (1, 32)         f32
    wfc2_ref  : (32, 128)       bf16   zero-padded past NUM_CLASSES
    bfc2_ref  : (1, 128)        f32
    out_ref   : (TN, 128)       f32
    """
    xb = x_ref[...]                                   # (TN, 6, 6, 256) bf16
    tn = xb.shape[0]

    # --- Conv2d(256,256,2) + bias + ReLU ------------------------------------
    # Only conv output positions (i, j) with i, j in 0..3 are consumed by the
    # pool, so each tap (ky, kx) slices the matching 4x4 input region.  The 4
    # taps are lane-concatenated along the contraction dim -> a single
    # (TN*16, 1024) x (1024, 256) MXU matmul with in-MXU accumulation.
    taps = []
    for ky in range(K):
        for kx in range(K):
            xs = xb[:, ky:ky + CPOS, kx:kx + CPOS, :]          # (TN,4,4,256)
            taps.append(xs.reshape(tn * CPOS * CPOS, CIN))
    xs_all = jnp.concatenate(taps, axis=-1)                    # (TN*16, 1024)
    conv = jnp.dot(xs_all, wconv_ref[...],
                   preferred_element_type=jnp.float32)         # (TN*16, 256)
    conv = jnp.maximum(conv + bconv_ref[...], 0.0)
    conv = conv.reshape(tn, CPOS * CPOS, COUT)                 # row = i*4 + j

    # --- MaxPool2d(2,2), cells lane-concatenated in (ph, pw) order ----------
    cells = []
    for ph in range(POOL):
        for pw in range(POOL):
            base = (POOL * ph) * CPOS + POOL * pw
            m = jnp.maximum(
                jnp.maximum(conv[:, base, :], conv[:, base + 1, :]),
                jnp.maximum(conv[:, base + CPOS, :], conv[:, base + CPOS + 1, :]))
            cells.append(m)
    pooled = jnp.concatenate(cells, axis=-1).astype(jnp.bfloat16)   # (TN, 1024)

    # --- fc1 + ReLU (one K=1024 matmul, flatten order (c, ph, pw) baked into
    # wfc1 in the wrapper) ----------------------------------------------------
    h = jnp.dot(pooled, wfc1_ref[...], preferred_element_type=jnp.float32)
    h = jnp.maximum(h + bfc1_ref[...], 0.0)                         # (TN, 32)

    # --- fc2 (bf16 operands, f32 accumulate + bias, lane-dense 128 cols) ----
    out_ref[...] = jnp.dot(h.astype(jnp.bfloat16), wfc2_ref[...],
                           preferred_element_type=jnp.float32) + bfc2_ref[...]


def _choose_tile(n, block_n):
    """Batch tile minimising padding; >=2 tiles when n >= 16 (v7x megacore)."""
    n_tiles = pl.cdiv(n, block_n)
    if n >= 16:
        n_tiles = max(n_tiles, 2)
    tn = _round_up(pl.cdiv(n, n_tiles), 8)
    n_pad = _round_up(n, tn)
    return tn, n_pad


def cnn_transfer_forward(x, params, *, block_n=128):
    """x: (N, 256, 6, 6) float32 NCHW.  Returns logits (N, NUM_CLASSES)."""
    wc, bc, w1, b1, w2, b2 = params
    n = x.shape[0]
    tn, n_pad = _choose_tile(n, block_n)
    grid = (n_pad // tn,)

    # NCHW -> NHWC, bf16 for the dominant input stream (one fused XLA pass).
    xr = jnp.transpose(x, (0, 2, 3, 1)).astype(jnp.bfloat16)     # (N,6,6,256)
    if n_pad != n:
        xr = jnp.pad(xr, ((0, n_pad - n), (0, 0), (0, 0), (0, 0)))

    # Conv weight (cout, cin, ky, kx) -> (ky, kx, cin, cout) -> (1024, 256).
    wconv = jnp.transpose(wc, (2, 3, 1, 0)).reshape(K * K * CIN, COUT)
    wconv = wconv.astype(jnp.bfloat16)
    bconv = bc.reshape(1, COUT).astype(jnp.float32)

    # fc1 weight (32, c*4 + ph*2 + pw) -> (ph, pw, c, 32) -> (1024, 32).
    wfc1 = jnp.transpose(w1.reshape(HID, COUT, POOL, POOL), (2, 3, 1, 0))
    wfc1 = wfc1.reshape(POOL * POOL * COUT, HID).astype(jnp.bfloat16)
    bfc1 = b1.reshape(1, HID).astype(jnp.float32)

    # fc2 padded to a lane-dense 128-wide output, bf16 operands.
    ncls = w2.shape[0]
    wfc2 = jnp.zeros((HID, OUT_PAD), jnp.float32).at[:, :ncls].set(w2.T)
    wfc2 = wfc2.astype(jnp.bfloat16)
    bfc2 = jnp.zeros((1, OUT_PAD), jnp.float32).at[:, :ncls].set(b2)

    flops = n_pad * (2 * CPOS * CPOS * (K * K * CIN) * COUT
                     + 2 * (POOL * POOL * COUT) * HID + 2 * HID * OUT_PAD)
    bytes_accessed = (xr.size * 2 + wconv.size * 2 + wfc1.size * 2
                      + wfc2.size * 2
                      + (bconv.size + bfc1.size + bfc2.size) * 4
                      + n_pad * OUT_PAD * 4)

    # Per-step VMEM: double-buffered x block (sublane-padded bf16), resident
    # weights, K-concat / f32 conv internal scratch, output block.  Capped
    # comfortably under v7x's 64 MiB physical VMEM.
    x_vmem = 2 * tn * HIN * 16 * CIN * 2
    w_vmem = 2 * int(wconv.size * 2 + wfc1.size * 2 + wfc2.size * 2
                     + (bconv.size + bfc1.size + bfc2.size) * 4)
    scratch_vmem = tn * CPOS * CPOS * (2 * K * K * CIN * 2 + COUT * 4) \
        + 2 * tn * OUT_PAD * 4
    vmem_limit = min(int(1.5 * (x_vmem + w_vmem + scratch_vmem)) + (4 << 20),
                     48 * 1024 * 1024)

    out = pl.pallas_call(
        cnn_transfer_kernel,
        out_shape=jax.ShapeDtypeStruct((n_pad, OUT_PAD), jnp.float32),
        grid=grid,
        in_specs=[
            pl.BlockSpec((tn, HIN, HIN, CIN), lambda i: (i, 0, 0, 0)),
            pl.BlockSpec((K * K * CIN, COUT), lambda i: (0, 0)),
            pl.BlockSpec((1, COUT), lambda i: (0, 0)),
            pl.BlockSpec((POOL * POOL * COUT, HID), lambda i: (0, 0)),
            pl.BlockSpec((1, HID), lambda i: (0, 0)),
            pl.BlockSpec((HID, OUT_PAD), lambda i: (0, 0)),
            pl.BlockSpec((1, OUT_PAD), lambda i: (0, 0)),
        ],
        out_specs=pl.BlockSpec((tn, OUT_PAD), lambda i: (i, 0)),
        compiler_params=pltpu.CompilerParams(
            dimension_semantics=("parallel",),
            vmem_limit_bytes=vmem_limit),
        cost_estimate=pl.CostEstimate(flops=int(flops), transcendentals=0,
                                      bytes_accessed=int(bytes_accessed)),
    )(xr, wconv, bconv, wfc1, bfc1, wfc2, bfc2)

    return out[:n, :ncls]


def reference_forward(x, params):
    """Pure-JAX f32 reference mirroring the PyTorch module."""
    wc, bc, w1, b1, w2, b2 = params
    y = lax.conv_general_dilated(
        x, wc, window_strides=(1, 1), padding='VALID',
        dimension_numbers=('NCHW', 'OIHW', 'NCHW'),
        precision=lax.Precision.HIGHEST)
    y = jnp.maximum(y + bc[None, :, None, None], 0.0)
    y = lax.reduce_window(y, -jnp.inf, lax.max,
                          (1, 1, POOL, POOL), (1, 1, POOL, POOL), 'VALID')
    f = y.reshape(x.shape[0], -1)                     # (N, 1024) in (c,h,w) order
    h = jnp.maximum(f @ w1.T + b1, 0.0)
    return h @ w2.T + b2


def make_params(key):
    ks = jax.random.split(key, 6)
    scale = 0.05
    wc = scale * jax.random.normal(ks[0], (COUT, CIN, K, K), jnp.float32)
    bc = scale * jax.random.normal(ks[1], (COUT,), jnp.float32)
    w1 = scale * jax.random.normal(ks[2], (HID, COUT * POOL * POOL), jnp.float32)
    b1 = scale * jax.random.normal(ks[3], (HID,), jnp.float32)
    w2 = scale * jax.random.normal(ks[4], (NUM_CLASSES, HID), jnp.float32)
    b2 = scale * jax.random.normal(ks[5], (NUM_CLASSES,), jnp.float32)
    return (wc, bc, w1, b1, w2, b2)


if __name__ == "__main__":
    key = jax.random.PRNGKey(0)
    kx, kx2, kp = jax.random.split(key, 3)
    params = make_params(kp)

    # Small case (shapes implied by the module: 256 x 6 x 6 features).
    batch = 2
    x = jax.random.normal(kx, (batch, CIN, HIN, HIN), jnp.float32)
    out = jax.block_until_ready(cnn_transfer_forward(x, params))
    ref = jax.block_until_ready(reference_forward(x, params))
    assert out.shape == (batch, NUM_CLASSES)
    np.testing.assert_allclose(np.asarray(out), np.asarray(ref),
                               rtol=3e-2, atol=3e-2)

    # Larger batch: exercises the padding-free tile choice (tn=40, grid=(2,)).
    xb = jax.random.normal(kx2, (80, CIN, HIN, HIN), jnp.float32)
    outb = jax.block_until_ready(cnn_transfer_forward(xb, params))
    refb = jax.block_until_ready(reference_forward(xb, params))
    np.testing.assert_allclose(np.asarray(outb), np.asarray(refb),
                               rtol=3e-2, atol=3e-2)

    print("KERNEL_OK")
</pallas_src>

<mosaic_0001>
module attributes {stable_mosaic.version = 11 : i64} {
  func.func @cnn_transfer_kernel(%arg0: i32, %arg1: memref<8x6x6x256xbf16, #tpu.memory_space<vmem>>, %arg2: memref<1024x256xbf16, #tpu.memory_space<vmem>>, %arg3: memref<1x256xf32, #tpu.memory_space<vmem>>, %arg4: memref<1024x32xbf16, #tpu.memory_space<vmem>>, %arg5: memref<1x32xf32, #tpu.memory_space<vmem>>, %arg6: memref<32x128xbf16, #tpu.memory_space<vmem>>, %arg7: memref<1x128xf32, #tpu.memory_space<vmem>>, %arg8: memref<8x128xf32, #tpu.memory_space<vmem>>) attributes {dimension_semantics = [#tpu.dimension_semantics<parallel>], iteration_bounds = array<i64: 1>, scalar_prefetch = 0 : i64, scratch_operands = 0 : i64, tpu.core_type = #tpu.core_type<tc>, window_params = [{transform_indices = @transform_0, window_bounds = array<i64: 8, 6, 6, 256>}, {pipeline_mode = #tpu.pipeline_mode<synchronous>, transform_indices = @transform_1, window_bounds = array<i64: 1024, 256>}, {pipeline_mode = #tpu.pipeline_mode<synchronous>, transform_indices = @transform_2, window_bounds = array<i64: 1, 256>}, {pipeline_mode = #tpu.pipeline_mode<synchronous>, transform_indices = @transform_3, window_bounds = array<i64: 1024, 32>}, {pipeline_mode = #tpu.pipeline_mode<synchronous>, transform_indices = @transform_4, window_bounds = array<i64: 1, 32>}, {pipeline_mode = #tpu.pipeline_mode<synchronous>, transform_indices = @transform_5, window_bounds = array<i64: 32, 128>}, {pipeline_mode = #tpu.pipeline_mode<synchronous>, transform_indices = @transform_6, window_bounds = array<i64: 1, 128>}, {transform_indices = @transform_7, window_bounds = array<i64: 8, 128>}]} {
    %c0 = arith.constant 0 : index
    %c0_0 = arith.constant 0 : index
    %c0_1 = arith.constant 0 : index
    %c0_2 = arith.constant 0 : index
    %0 = vector.load %arg1[%c0, %c0_0, %c0_1, %c0_2] : memref<8x6x6x256xbf16, #tpu.memory_space<vmem>>, vector<8x6x6x256xbf16>
    %1 = vector.extract_strided_slice %0 {offsets = [0, 0, 0, 0], sizes = [8, 4, 4, 256], strides = [1, 1, 1, 1]} : vector<8x6x6x256xbf16> to vector<8x4x4x256xbf16>
    %2 = vector.shape_cast %1 : vector<8x4x4x256xbf16> to vector<128x256xbf16>
    %3 = vector.extract_strided_slice %0 {offsets = [0, 0, 1, 0], sizes = [8, 4, 4, 256], strides = [1, 1, 1, 1]} : vector<8x6x6x256xbf16> to vector<8x4x4x256xbf16>
    %4 = vector.shape_cast %3 : vector<8x4x4x256xbf16> to vector<128x256xbf16>
    %5 = vector.extract_strided_slice %0 {offsets = [0, 1, 0, 0], sizes = [8, 4, 4, 256], strides = [1, 1, 1, 1]} : vector<8x6x6x256xbf16> to vector<8x4x4x256xbf16>
    %6 = vector.shape_cast %5 : vector<8x4x4x256xbf16> to vector<128x256xbf16>
    %7 = vector.extract_strided_slice %0 {offsets = [0, 1, 1, 0], sizes = [8, 4, 4, 256], strides = [1, 1, 1, 1]} : vector<8x6x6x256xbf16> to vector<8x4x4x256xbf16>
    %8 = vector.shape_cast %7 : vector<8x4x4x256xbf16> to vector<128x256xbf16>
    %9 = tpu.concatenate %2, %4, %6, %8 in 1 : vector<128x256xbf16>, vector<128x256xbf16>, vector<128x256xbf16>, vector<128x256xbf16> -> vector<128x1024xbf16>
    %c0_3 = arith.constant 0 : index
    %c0_4 = arith.constant 0 : index
    %10 = vector.load %arg2[%c0_3, %c0_4] : memref<1024x256xbf16, #tpu.memory_space<vmem>>, vector<1024x256xbf16>
    %cst = arith.constant dense<0.000000e+00> : vector<128x256xf32>
    %11 = tpu.matmul %9, %10, %cst {dimension_numbers = #tpu.dot_dimension_numbers<[1], [0], [0], [1], [0, 0, 1, 1], [], []>} : vector<128x1024xbf16>, vector<1024x256xbf16>, vector<128x256xf32> -> vector<128x256xf32>
    %c0_5 = arith.constant 0 : index
    %c0_6 = arith.constant 0 : index
    %12 = vector.load %arg3[%c0_5, %c0_6] : memref<1x256xf32, #tpu.memory_space<vmem>>, vector<1x256xf32>
    %13 = vector.broadcast %12 : vector<1x256xf32> to vector<128x256xf32>
    %14 = arith.addf %11, %13 : vector<128x256xf32>
    %cst_7 = arith.constant 0.000000e+00 : f32
    %15 = vector.broadcast %cst_7 : f32 to vector<128x256xf32>
    %16 = arith.maximumf %14, %15 : vector<128x256xf32>
    %17 = vector.shape_cast %16 : vector<128x256xf32> to vector<8x16x256xf32>
    %18 = vector.extract_strided_slice %17 {offsets = [0, 0, 0], sizes = [8, 1, 256], strides = [1, 1, 1]} : vector<8x16x256xf32> to vector<8x1x256xf32>
    %19 = vector.shape_cast %18 : vector<8x1x256xf32> to vector<8x256xf32>
    %20 = vector.extract_strided_slice %17 {offsets = [0, 1, 0], sizes = [8, 1, 256], strides = [1, 1, 1]} : vector<8x16x256xf32> to vector<8x1x256xf32>
    %21 = vector.shape_cast %20 : vector<8x1x256xf32> to vector<8x256xf32>
    %22 = arith.maximumf %19, %21 : vector<8x256xf32>
    %23 = vector.extract_strided_slice %17 {offsets = [0, 4, 0], sizes = [8, 1, 256], strides = [1, 1, 1]} : vector<8x16x256xf32> to vector<8x1x256xf32>
    %24 = vector.shape_cast %23 : vector<8x1x256xf32> to vector<8x256xf32>
    %25 = vector.extract_strided_slice %17 {offsets = [0, 5, 0], sizes = [8, 1, 256], strides = [1, 1, 1]} : vector<8x16x256xf32> to vector<8x1x256xf32>
    %26 = vector.shape_cast %25 : vector<8x1x256xf32> to vector<8x256xf32>
    %27 = arith.maximumf %24, %26 : vector<8x256xf32>
    %28 = arith.maximumf %22, %27 : vector<8x256xf32>
    %29 = vector.extract_strided_slice %17 {offsets = [0, 2, 0], sizes = [8, 1, 256], strides = [1, 1, 1]} : vector<8x16x256xf32> to vector<8x1x256xf32>
    %30 = vector.shape_cast %29 : vector<8x1x256xf32> to vector<8x256xf32>
    %31 = vector.extract_strided_slice %17 {offsets = [0, 3, 0], sizes = [8, 1, 256], strides = [1, 1, 1]} : vector<8x16x256xf32> to vector<8x1x256xf32>
    %32 = vector.shape_cast %31 : vector<8x1x256xf32> to vector<8x256xf32>
    %33 = arith.maximumf %30, %32 : vector<8x256xf32>
    %34 = vector.extract_strided_slice %17 {offsets = [0, 6, 0], sizes = [8, 1, 256], strides = [1, 1, 1]} : vector<8x16x256xf32> to vector<8x1x256xf32>
    %35 = vector.shape_cast %34 : vector<8x1x256xf32> to vector<8x256xf32>
    %36 = vector.extract_strided_slice %17 {offsets = [0, 7, 0], sizes = [8, 1, 256], strides = [1, 1, 1]} : vector<8x16x256xf32> to vector<8x1x256xf32>
    %37 = vector.shape_cast %36 : vector<8x1x256xf32> to vector<8x256xf32>
    %38 = arith.maximumf %35, %37 : vector<8x256xf32>
    %39 = arith.maximumf %33, %38 : vector<8x256xf32>
    %40 = vector.extract_strided_slice %17 {offsets = [0, 8, 0], sizes = [8, 1, 256], strides = [1, 1, 1]} : vector<8x16x256xf32> to vector<8x1x256xf32>
    %41 = vector.shape_cast %40 : vector<8x1x256xf32> to vector<8x256xf32>
    %42 = vector.extract_strided_slice %17 {offsets = [0, 9, 0], sizes = [8, 1, 256], strides = [1, 1, 1]} : vector<8x16x256xf32> to vector<8x1x256xf32>
    %43 = vector.shape_cast %42 : vector<8x1x256xf32> to vector<8x256xf32>
    %44 = arith.maximumf %41, %43 : vector<8x256xf32>
    %45 = vector.extract_strided_slice %17 {offsets = [0, 12, 0], sizes = [8, 1, 256], strides = [1, 1, 1]} : vector<8x16x256xf32> to vector<8x1x256xf32>
    %46 = vector.shape_cast %45 : vector<8x1x256xf32> to vector<8x256xf32>
    %47 = vector.extract_strided_slice %17 {offsets = [0, 13, 0], sizes = [8, 1, 256], strides = [1, 1, 1]} : vector<8x16x256xf32> to vector<8x1x256xf32>
    %48 = vector.shape_cast %47 : vector<8x1x256xf32> to vector<8x256xf32>
    %49 = arith.maximumf %46, %48 : vector<8x256xf32>
    %50 = arith.maximumf %44, %49 : vector<8x256xf32>
    %51 = vector.extract_strided_slice %17 {offsets = [0, 10, 0], sizes = [8, 1, 256], strides = [1, 1, 1]} : vector<8x16x256xf32> to vector<8x1x256xf32>
    %52 = vector.shape_cast %51 : vector<8x1x256xf32> to vector<8x256xf32>
    %53 = vector.extract_strided_slice %17 {offsets = [0, 11, 0], sizes = [8, 1, 256], strides = [1, 1, 1]} : vector<8x16x256xf32> to vector<8x1x256xf32>
    %54 = vector.shape_cast %53 : vector<8x1x256xf32> to vector<8x256xf32>
    %55 = arith.maximumf %52, %54 : vector<8x256xf32>
    %56 = vector.extract_strided_slice %17 {offsets = [0, 14, 0], sizes = [8, 1, 256], strides = [1, 1, 1]} : vector<8x16x256xf32> to vector<8x1x256xf32>
    %57 = vector.shape_cast %56 : vector<8x1x256xf32> to vector<8x256xf32>
    %58 = vector.extract_strided_slice %17 {offsets = [0, 15, 0], sizes = [8, 1, 256], strides = [1, 1, 1]} : vector<8x16x256xf32> to vector<8x1x256xf32>
    %59 = vector.shape_cast %58 : vector<8x1x256xf32> to vector<8x256xf32>
    %60 = arith.maximumf %57, %59 : vector<8x256xf32>
    %61 = arith.maximumf %55, %60 : vector<8x256xf32>
    %62 = tpu.concatenate %28, %39, %50, %61 in 1 : vector<8x256xf32>, vector<8x256xf32>, vector<8x256xf32>, vector<8x256xf32> -> vector<8x1024xf32>
    %63 = arith.truncf %62 : vector<8x1024xf32> to vector<8x1024xbf16>
    %c0_8 = arith.constant 0 : index
    %c0_9 = arith.constant 0 : index
    %64 = vector.load %arg4[%c0_8, %c0_9] : memref<1024x32xbf16, #tpu.memory_space<vmem>>, vector<1024x32xbf16>
    %cst_10 = arith.constant dense<0.000000e+00> : vector<8x32xf32>
    %65 = tpu.matmul %63, %64, %cst_10 {dimension_numbers = #tpu.dot_dimension_numbers<[1], [0], [0], [1], [0, 0, 1, 1], [], []>} : vector<8x1024xbf16>, vector<1024x32xbf16>, vector<8x32xf32> -> vector<8x32xf32>
    %c0_11 = arith.constant 0 : index
    %c0_12 = arith.constant 0 : index
    %66 = vector.load %arg5[%c0_11, %c0_12] : memref<1x32xf32, #tpu.memory_space<vmem>>, vector<1x32xf32>
    %67 = vector.broadcast %66 : vector<1x32xf32> to vector<8x32xf32>
    %68 = arith.addf %65, %67 : vector<8x32xf32>
    %cst_13 = arith.constant 0.000000e+00 : f32
    %69 = vector.broadcast %cst_13 : f32 to vector<8x32xf32>
    %70 = arith.maximumf %68, %69 : vector<8x32xf32>
    %71 = arith.truncf %70 : vector<8x32xf32> to vector<8x32xbf16>
    %c0_14 = arith.constant 0 : index
    %c0_15 = arith.constant 0 : index
    %72 = vector.load %arg6[%c0_14, %c0_15] : memref<32x128xbf16, #tpu.memory_space<vmem>>, vector<32x128xbf16>
    %cst_16 = arith.constant dense<0.000000e+00> : vector<8x128xf32>
    %73 = tpu.matmul %71, %72, %cst_16 {dimension_numbers = #tpu.dot_dimension_numbers<[1], [0], [0], [1], [0, 0, 1, 1], [], []>} : vector<8x32xbf16>, vector<32x128xbf16>, vector<8x128xf32> -> vector<8x128xf32>
    %c0_17 = arith.constant 0 : index
    %c0_18 = arith.constant 0 : index
    %74 = vector.load %arg7[%c0_17, %c0_18] : memref<1x128xf32, #tpu.memory_space<vmem>>, vector<1x128xf32>
    %75 = vector.broadcast %74 : vector<1x128xf32> to vector<8x128xf32>
    %76 = arith.addf %73, %75 : vector<8x128xf32>
    %c0_19 = arith.constant 0 : index
    %c0_20 = arith.constant 0 : index
    %77 = vector.load %arg8[%c0_19, %c0_20] : memref<8x128xf32, #tpu.memory_space<vmem>>, vector<8x128xf32>
    tpu.vector_store %arg8[%c0_19, %c0_20], %76 {strides = array<i32>} : memref<8x128xf32, #tpu.memory_space<vmem>>, vector<8x128xf32>,
    return
  }
  func.func @transform_0(%arg0: i32) -> (i32, i32, i32, i32) {
    %c0_i32 = arith.constant 0 : i32
    %c0_i32_0 = arith.constant 0 : i32
    %c0_i32_1 = arith.constant 0 : i32
    %c0_i32_2 = arith.constant 0 : i32
    return %arg0, %c0_i32, %c0_i32_0, %c0_i32_1 : i32, i32, i32, i32
  }
  func.func @transform_1(%arg0: i32) -> (i32, i32) {
    %c0_i32 = arith.constant 0 : i32
    %c0_i32_0 = arith.constant 0 : i32
    %c0_i32_1 = arith.constant 0 : i32
    return %c0_i32, %c0_i32_0 : i32, i32
  }
  func.func @transform_2(%arg0: i32) -> (i32, i32) {
    %c0_i32 = arith.constant 0 : i32
    %c0_i32_0 = arith.constant 0 : i32
    %c0_i32_1 = arith.constant 0 : i32
    return %c0_i32, %c0_i32_0 : i32, i32
  }
  func.func @transform_3(%arg0: i32) -> (i32, i32) {
    %c0_i32 = arith.constant 0 : i32
    %c0_i32_0 = arith.constant 0 : i32
    %c0_i32_1 = arith.constant 0 : i32
    return %c0_i32, %c0_i32_0 : i32, i32
  }
  func.func @transform_4(%arg0: i32) -> (i32, i32) {
    %c0_i32 = arith.constant 0 : i32
    %c0_i32_0 = arith.constant 0 : i32
    %c0_i32_1 = arith.constant 0 : i32
    return %c0_i32, %c0_i32_0 : i32, i32
  }
  func.func @transform_5(%arg0: i32) -> (i32, i32) {
    %c0_i32 = arith.constant 0 : i32
    %c0_i32_0 = arith.constant 0 : i32
    %c0_i32_1 = arith.constant 0 : i32
    return %c0_i32, %c0_i32_0 : i32, i32
  }
  func.func @transform_6(%arg0: i32) -> (i32, i32) {
    %c0_i32 = arith.constant 0 : i32
    %c0_i32_0 = arith.constant 0 : i32
    %c0_i32_1 = arith.constant 0 : i32
    return %c0_i32, %c0_i32_0 : i32, i32
  }
  func.func @transform_7(%arg0: i32) -> (i32, i32) {
    %c0_i32 = arith.constant 0 : i32
    %c0_i32_0 = arith.constant 0 : i32
    return %arg0, %c0_i32 : i32, i32
  }
}

</mosaic_0001>

<bundles_post_ra>
// kernel: tpu_custom_call.1
= control target key start
LH: loop header
LB: loop body
LE: loop exit
PB: predicated region body
PF: predicated region fallthrough
CT: control target
= control target key end

     0   :  { %v4716_v39 = vmov 1983009808   ;;  %v1000_v41 = vlaneseq  ;;  %vm356_vm0 = vsmask.f32 1280  ;;  %vm357_vm1 = vsmask.f32 3336  ;;  %s6436_s0 = inlined_call_operand.vmem [shape: bf16[8,6,6,256], index: 0, kind: input, shape index: {}]   ;;  %s6437_s1 = inlined_call_operand.vmem [shape: bf16[1024,256], index: 1, kind: input, shape index: {}]   ;;  %s6438_s2 = inlined_call_operand.vmem [shape: f32[1,256], index: 2, kind: input, shape index: {}]   ;;  %s6439_s3 = inlined_call_operand.vmem [shape: bf16[1024,32], index: 3, kind: input, shape index: {}]   ;;  %s6440_s4 = inlined_call_operand.vmem [shape: f32[1,32], index: 4, kind: input, shape index: {}]   ;;  %s6441_s5 = inlined_call_operand.vmem [shape: bf16[32,128], index: 5, kind: input, shape index: {}]   ;;  %s6442_s6 = inlined_call_operand.vmem [shape: f32[1,128], index: 6, kind: input, shape index: {}]   ;;  %s6443_s7 = inlined_call_operand.hbm [shape: f32[8,128], index: 7, kind: output, shape index: {}]  }
   0x1   :  { %v4425_v0 = vld [vmem:[%s6437_s1 + $0x74] ss:$8 sps:$4 sm:$0xff]   ;;  %v4429_v2 = vld [vmem:[%s6437_s1 + $0x70] ss:$8 sps:$4 sm:$0xff]   ;;  %v4431_v4 = vld [vmem:[%s6437_s1 + $0x64] ss:$8 sps:$4 sm:$0xff]   ;;  %v998_v40 = vunpack.c.l.s4 %v4716_v39 }
   0x2   :  { %v4427_v1 = vld [vmem:[%s6437_s1 + $0x174] ss:$8 sps:$4 sm:$0xff]   ;;  %2415 = vmatprep.subr.bf16.mxu0 %v4425_v0  ;;  %v4430_v3 = vld [vmem:[%s6437_s1 + $0x170] ss:$8 sps:$4 sm:$0xff]   ;;  %v4433_v5 = vld [vmem:[%s6437_s1 + $0x164] ss:$8 sps:$4 sm:$0xff]  }
   0x3   :  { %2528 = vmatprep.subr.bf16.mxu1 %v4427_v1  ;;  %2416 = vmatpush1.bf16.msra.mxu0 %v4429_v2  ;;  %v4435_v6 = vld [vmem:[%s6437_s1 + $0x60] ss:$8 sps:$4 sm:$0xff]   ;;  %v4437_v8 = vld [vmem:[%s6437_s1 + $0x54] ss:$8 sps:$4 sm:$0xff]   ;;  %v4441_v10 = vld [vmem:[%s6437_s1 + $0x50] ss:$8 sps:$4 sm:$0xff]   ;;  %v999_v47 = vunpack.c.0.s8 %v998_v40 }
   0x4   :  { %2529 = vmatpush1.bf16.msra.mxu1 %v4430_v3  ;;  %2417 = vmatprep.subr.bf16.mxu0 %v4431_v4  ;;  %v4436_v7 = vld [vmem:[%s6437_s1 + $0x160] ss:$8 sps:$4 sm:$0xff]   ;;  %v4439_v9 = vld [vmem:[%s6437_s1 + $0x154] ss:$8 sps:$4 sm:$0xff]   ;;  %v4442_v11 = vld [vmem:[%s6437_s1 + $0x150] ss:$8 sps:$4 sm:$0xff]  }
   0x5   :  { %2530 = vmatprep.subr.bf16.mxu1 %v4433_v5  ;;  %v4443_v12 = vld [vmem:[%s6437_s1 + $0x44] ss:$8 sps:$4 sm:$0xff]   ;;  %v4447_v14 = vld [vmem:[%s6437_s1 + $0x40] ss:$8 sps:$4 sm:$0xff]   ;;  %v4449_v16 = vld [vmem:[%s6437_s1 + $0x34] ss:$8 sps:$4 sm:$0xff]  }
   0x6   :  { %v4445_v13 = vld [vmem:[%s6437_s1 + $0x144] ss:$8 sps:$4 sm:$0xff]   ;;  %v4448_v15 = vld [vmem:[%s6437_s1 + $0x140] ss:$8 sps:$4 sm:$0xff]   ;;  %v4451_v17 = vld [vmem:[%s6437_s1 + $0x134] ss:$8 sps:$4 sm:$0xff]  }
   0x7   :  { %2418 = vmatpush1.bf16.msra.mxu0 %v4435_v6  ;;  %v4453_v18 = vld [vmem:[%s6437_s1 + $0x30] ss:$8 sps:$4 sm:$0xff]   ;;  %v4455_v20 = vld [vmem:[%s6437_s1 + $0x24] ss:$8 sps:$4 sm:$0xff]   ;;  %v4459_v22 = vld [vmem:[%s6437_s1 + $0x20] ss:$8 sps:$4 sm:$0xff]  }
   0x8   :  { %2531 = vmatpush1.bf16.msra.mxu1 %v4436_v7  ;;  %2419 = vmatprep.subr.bf16.mxu0 %v4437_v8  ;;  %v4454_v19 = vld [vmem:[%s6437_s1 + $0x130] ss:$8 sps:$4 sm:$0xff]   ;;  %v4457_v21 = vld [vmem:[%s6437_s1 + $0x124] ss:$8 sps:$4 sm:$0xff]   ;;  %v4460_v23 = vld [vmem:[%s6437_s1 + $0x120] ss:$8 sps:$4 sm:$0xff]  }
   0x9   :  { %2532 = vmatprep.subr.bf16.mxu1 %v4439_v9  ;;  %v4461_v24 = vld [vmem:[%s6437_s1 + $0x14] ss:$8 sps:$4 sm:$0xff]   ;;  %v4465_v26 = vld [vmem:[%s6437_s1 + $0x10] ss:$8 sps:$4 sm:$0xff]   ;;  %v4467_v28 = vld [vmem:[%s6437_s1 + $0x4] ss:$8 sps:$4 sm:$0xff]  }
   0xa   :  { %v4463_v25 = vld [vmem:[%s6437_s1 + $0x114] ss:$8 sps:$4 sm:$0xff]   ;;  %v4466_v27 = vld [vmem:[%s6437_s1 + $0x110] ss:$8 sps:$4 sm:$0xff]   ;;  %v4469_v29 = vld [vmem:[%s6437_s1 + $0x104] ss:$8 sps:$4 sm:$0xff]  }
   0xb   :  { %2420 = vmatpush1.bf16.msra.mxu0 %v4441_v10  ;;  %v4471_v30 = vld [vmem:[%s6437_s1] ss:$8 sps:$4 sm:$0xff]   ;;  %v4473_v32 = vld [vmem:[%s6437_s1 + $0xf4] ss:$8 sps:$4 sm:$0xff]   ;;  %v4477_v34 = vld [vmem:[%s6437_s1 + $0xf0] ss:$8 sps:$4 sm:$0xff]  }
   0xc   :  { %2533 = vmatpush1.bf16.msra.mxu1 %v4442_v11  ;;  %2421 = vmatprep.subr.bf16.mxu0 %v4443_v12  ;;  %v4472_v31 = vld [vmem:[%s6437_s1 + $0x100] ss:$8 sps:$4 sm:$0xff]   ;;  %v4475_v33 = vld [vmem:[%s6437_s1 + $0x1f4] ss:$8 sps:$4 sm:$0xff]   ;;  %v4478_v35 = vld [vmem:[%s6437_s1 + $0x1f0] ss:$8 sps:$4 sm:$0xff]  }
   0xd   :  { %2534 = vmatprep.subr.bf16.mxu1 %v4445_v13  ;;  %v4479_v36 = vld [vmem:[%s6437_s1 + $0xe4] ss:$8 sps:$4 sm:$0xff]   ;;  %v4483_v38 = vld [vmem:[%s6437_s1 + $0xe0] ss:$8 sps:$4 sm:$0xff]   ;;  %v4485_v43 = vld [vmem:[%s6437_s1 + $0xd4] ss:$8 sps:$4 sm:$0xff]  }
   0xe   :  { %v4481_v37 = vld [vmem:[%s6437_s1 + $0x1e4] ss:$8 sps:$4 sm:$0xff]   ;;  %v4484_v42 = vld [vmem:[%s6437_s1 + $0x1e0] ss:$8 sps:$4 sm:$0xff]   ;;  %v4487_v44 = vld [vmem:[%s6437_s1 + $0x1d4] ss:$8 sps:$4 sm:$0xff]  }
   0xf   :  { %2422 = vmatpush1.bf16.msra.mxu0 %v4447_v14  ;;  %v4489_v45 = vld [vmem:[%s6437_s1 + $0xd0] ss:$8 sps:$4 sm:$0xff]   ;;  %v4892_v48 = vshrl.u32 %v1000_v41, 7  ;;  %v4491_v49 = vld [vmem:[%s6437_s1 + $0xc4] ss:$8 sps:$4 sm:$0xff]   ;;  %vm4919_vm4 = vmor %vm356_vm0, %vm357_vm1 }
  0x10   :  { %2535 = vmatpush1.bf16.msra.mxu1 %v4448_v15  ;;  %2423 = vmatprep.subr.bf16.mxu0 %v4449_v16  ;;  %v4490_v46 = vld [vmem:[%s6437_s1 + $0x1d0] ss:$8 sps:$4 sm:$0xff]   ;;  %v4493_v50 = vld [vmem:[%s6437_s1 + $0x1c4] ss:$8 sps:$4 sm:$0xff]   ;;  %vm359_vm2 = vsmask.f32 5392 }
  0x11   :  { %2536 = vmatprep.subr.bf16.mxu1 %v4451_v17  ;;  %6449 = vst [vmem:[#allocation5_spill] sm:$0xff] %v4892_v48  ;;  %v4495_v51 = vld [vmem:[%s6437_s1 + $0xc0] ss:$8 sps:$4 sm:$0xff]   ;;  %vm361_vm3 = vsmask.f32 7448  ;;  %v4916_v56 = vsub.s32 %v999_v47, %v4892_v48  ;;  %vm4946_vm5 = vmor %vm4919_vm4, %vm359_vm2 }
  0x12   :  { %v4496_v52 = vld [vmem:[%s6437_s1 + $0x1c0] ss:$8 sps:$4 sm:$0xff]   ;;  %v4497_v53 = vld [vmem:[%s6437_s1 + $0xb4] ss:$8 sps:$4 sm:$0xff]   ;;  %v4501_v9 = vld [vmem:[%s6437_s1 + $0xb0] ss:$8 sps:$4 sm:$0xff]  }
  0x13   :  { %2424 = vmatpush1.bf16.msra.mxu0 %v4453_v18  ;;  %v4499_v54 = vld [vmem:[%s6437_s1 + $0x1b4] ss:$8 sps:$4 sm:$0xff]   ;;  %v4085_v55 = vld.sshfl [vmem:[%s6436_s0] sm:$0x5f pattern:$0x76325410]  ;;  %vm4977_vm6 = vmor %vm4946_vm5, %vm361_vm3 }
  0x14   :  { %2537 = vmatpush1.bf16.msra.mxu1 %v4454_v19  ;;  %2425 = vmatprep.subr.bf16.mxu0 %v4455_v20  ;;  %v4926_v58 = vld.sshfl [vmem:[%s6436_s0 + $0x8] sm:$0x5f pattern:$0x76325410]  ;;  %v364_v59 = vshrl.u32 %v4085_v55, 16  ;;  %v367_v60 = vshll.u32 %v4085_v55, 16  ;;  %v324_v61 = vcombine.high %v4085_v55, %v4085_v55 }
  0x15   :  { %2538 = vmatprep.subr.bf16.mxu1 %v4457_v21  ;;  %v4931_v62 = vld.sshfl [vmem:[%s6436_s0 + $0x10] sm:$0x5f pattern:$0x76325410]  ;;  %v995_v63 = vcombine.low %v4085_v55, %v4926_v58  ;;  %v325_v0 = vcombine.high %v4926_v58, %v4926_v58  ;;  %v378_v1 = vshrl.u32 %v4926_v58, 16  ;;  %v381_v2 = vshll.u32 %v4926_v58, 16 }
  0x16   :  { %v4088_v3 = vld.sshfl [vmem:[%s6436_s0 + $0x18] sm:$0x5f pattern:$0x76325410]  ;;  %v326_v4 = vcombine.high %v4931_v62, %v4931_v62  ;;  %v366_v6 = vrot.slane %v364_v59, 6  ;;  %v369_v7 = vrot.slane %v367_v60, 7 }
  0x17   :  { %2426 = vmatpush1.bf16.msra.mxu0 %v4459_v22  ;;  %v4502_v10 = vld [vmem:[%s6437_s1 + $0x1b0] ss:$8 sps:$4 sm:$0xff]   ;;  %v996_v11 = vcombine.low %v4931_v62, %v4088_v3  ;;  %v4960_v12 = vrot.slane %v995_v63, %v4916_v56  ;;  %v327_v13 = vcombine.high %v4088_v3, %v4088_v3  ;;  %v373_v14 = vshll.u32 %v324_v61, 16  ;;  %v4503_v15 = vld [vmem:[%s6437_s1 + $0xa4] ss:$8 sps:$4 sm:$0xff]  }
  0x18   :  { %2539 = vmatpush1.bf16.msra.mxu1 %v4460_v23  ;;  %2427 = vmatprep.subr.bf16.mxu0 %v4461_v24  ;;  %v370_v16 = vor.u32 %v369_v7, %v366_v6  ;;  %v380_v17 = vrot.slane %v378_v1, 6  ;;  %v383_v18 = vrot.slane %v381_v2, 7  ;;  %v387_v19 = vshll.u32 %v325_v0, 16  ;;  %v4505_v20 = vld [vmem:[%s6437_s1 + $0x1a4] ss:$8 sps:$4 sm:$0xff]  }
  0x19   :  { %2540 = vmatprep.subr.bf16.mxu1 %v4463_v25  ;;  %v4969_v21 = vrot.slane %v996_v11, %v4916_v56  ;;  %v4117_v22 = vld.sshfl [vmem:[%s6436_s0 + $0x20] sm:$0x5f pattern:$0x76325410]  ;;  %v375_v24 = vrot.slane %v373_v14, 7  ;;  %v392_v25 = vshrl.u32 %v4931_v62, 16 }
  0x1a   :  { %v409_v41 = vshll.u32 %v4088_v3, 16  ;;  %v4513_v47 = vld [vmem:[%s6437_s1 + $0x90] ss:$8 sps:$4 sm:$0xff]   ;;  %v4517_v55 = vld [vmem:[%s6437_s1 + $0x184] ss:$8 sps:$4 sm:$0xff]  }
  0x1b   :  { %2428 = vmatpush1.bf16.msra.mxu0 %v4465_v26  ;;  %v395_v26 = vshll.u32 %v4931_v62, 16  ;;  %v1011_v2 = vcombine.low %v4960_v12, %v4969_v21  ;;  %v4090_v7 = vld.sshfl [vmem:[%s6436_s0 + $0x38] sm:$0x5f pattern:$0x76325410] }
  0x1c   :  { %2541 = vmatpush1.bf16.msra.mxu1 %v4466_v27  ;;  %2429 = vmatprep.subr.bf16.mxu0 %v4467_v28  ;;  %v4507_v27 = vld [vmem:[%s6437_s1 + $0xa0] ss:$8 sps:$4 sm:$0xff]   ;;  %v371_v28 = vrot.slane %v370_v16, 2 }
  0x1d   :  { %2542 = vmatprep.subr.bf16.mxu1 %v4469_v29  ;;  %v384_v29 = vor.u32 %v383_v18, %v380_v17  ;;  %v5036_v14 = vld.sshfl [vmem:[%s6436_s0 + $0x40] sm:$0x5f pattern:$0x76325410] }
  0x1e   :  { %v4519_v16 = vld [vmem:[%s6437_s1 + $0x80] ss:$8 sps:$4 sm:$0xff]  }
  0x1f   :  { %2430 = vmatpush1.bf16.msra.mxu0 %v4471_v30  ;;  %v389_v30 = vrot.slane %v387_v19, 7  ;;  %v385_v39 = vrot.slane %v384_v29, 2  ;;  %v5044_v17 = vld.sshfl [vmem:[%s6436_s0 + $0x48] sm:$0x5f pattern:$0x76325410] }
  0x20   :  { %2543 = vmatpush1.bf16.msra.mxu1 %v4472_v31  ;;  %2431 = vmatprep.subr.bf16.mxu0 %v4473_v32  ;;  %v401_v31 = vshll.u32 %v326_v4, 16  ;;  %v4508_v32 = vld [vmem:[%s6437_s1 + $0x1a0] ss:$8 sps:$4 sm:$0xff]   ;;  %v331_v29 = vcombine.high %v5044_v17, %v5044_v17 }
  0x21   :  { %2544 = vmatprep.subr.bf16.mxu1 %v4475_v33  ;;  %v1012_v33 = vcombine.high %v4960_v12, %v4969_v21 }
  0x22   :  { %v403_v40 = vrot.slane %v401_v31, 7  ;;  %v4526_v31 = vld [vmem:[%s6437_s1 + $0x374] ss:$8 sps:$4 sm:$0xff]  }
  0x23   :  { %2432 = vmatpush2.bf16.msra.mxu0 %v4477_v34  ;;  %v394_v34 = vrot.slane %v392_v25, 6  ;;  %2447 = vmatprep.mubr.bf16.mxu0 %v1012_v33 }
  0x24   :  { %2545 = vmatpush2.bf16.msra.mxu1 %v4478_v35  ;;  %2433 = vmatprep.subr.bf16.mxu0 %v4479_v36  ;;  %v397_v35 = vrot.slane %v395_v26, 7  ;;  %v406_v36 = vshrl.u32 %v4088_v3, 16  ;;  %v4089_v3 = vld.sshfl [vmem:[%s6436_s0 + $0x30] sm:$0x5f pattern:$0x76325410] }
  0x25   :  { %2546 = vmatprep.subr.bf16.mxu1 %v4481_v37  ;;  %v4509_v37 = vld [vmem:[%s6437_s1 + $0x94] ss:$8 sps:$4 sm:$0xff]   ;;  %v1013_v18 = vcombine.low %v4089_v3, %v4090_v7  ;;  %v328_v19 = vcombine.high %v4089_v3, %v4089_v3 }
  0x27   :  { %2434 = vmatpush2.bf16.msra.mxu0 %v4483_v38  ;;  %v376_v38 = vsel %vm4977_vm6, %v371_v28, %v375_v24  ;;  %v4520_v24 = vld [vmem:[%s6437_s1 + $0x180] ss:$8 sps:$4 sm:$0xff]   ;;  %v1014_v28 = vcombine.low %v5036_v14, %v5044_v17 }
  0x28   :  { %2547 = vmatpush2.bf16.msra.mxu1 %v4484_v42  ;;  %2435 = vmatprep.subr.bf16.mxu0 %v4485_v43  ;;  %v4511_v42 = vld [vmem:[%s6437_s1 + $0x194] ss:$8 sps:$4 sm:$0xff]   ;;  %v398_v43 = vor.u32 %v397_v35, %v394_v34 }
  0x29   :  { %2548 = vmatprep.subr.bf16.mxu1 %v4487_v44  ;;  %v408_v44 = vrot.slane %v406_v36, 6  ;;  %v4521_v36 = vld [vmem:[%s6437_s1 + $0x270] ss:$8 sps:$4 sm:$0xff]  }
  0x2a   :  { %v399_v57 = vrot.slane %v398_v43, 2  ;;  %v4529_v43 = vld [vmem:[%s6437_s1 + $0x264] ss:$8 sps:$4 sm:$0xff]  }
  0x2b   :  { %2436 = vmatpush2.bf16.msra.mxu0 %v4489_v45  ;;  %v415_v45 = vshll.u32 %v327_v13, 16 }
  0x2c   :  { %2549 = vmatpush2.bf16.msra.mxu1 %v4490_v46  ;;  %2437 = vmatprep.subr.bf16.mxu0 %v4491_v49  ;;  %v875_v46 = vcombine.high %v4117_v22, %v4117_v22  ;;  %v4514_v49 = vld [vmem:[%s6437_s1 + $0x190] ss:$8 sps:$4 sm:$0xff]   ;;  %v5023_v4 = vsel %vm4977_vm6, %v399_v57, %v403_v40 }
  0x2d   :  { %2550 = vmatprep.subr.bf16.mxu1 %v4493_v50  ;;  %v5007_v50 = vsel %vm4977_vm6, %v385_v39, %v389_v30  ;;  %v417_v59 = vrot.slane %v415_v45, 7  ;;  %v434_v39 = vshrl.u32 %v4090_v7, 16  ;;  %v437_v45 = vshll.u32 %v4090_v7, 16 }
  0x2e   :  { %v893_v60 = vshll.u32 %v875_v46, 16  ;;  %v1155_v61 = vcombine.low %v376_v38, %v5007_v50  ;;  %v429_v38 = vshll.u32 %v328_v19, 16  ;;  %v4532_v46 = vld [vmem:[%s6437_s1 + $0x364] ss:$8 sps:$4 sm:$0xff]   ;;  %v4538_v19 = vld [vmem:[%s6437_s1 + $0x354] ss:$8 sps:$4 sm:$0xff]  }
  0x2f   :  { %2438 = vmatpush2.bf16.msra.mxu0 %v4495_v51  ;;  %v411_v51 = vrot.slane %v409_v41, 7  ;;  %v439_v57 = vrot.slane %v437_v45, 7 }
  0x30   :  { %2551 = vmatpush2.bf16.msra.mxu1 %v4496_v52  ;;  %2439 = vmatprep.subr.bf16.mxu0 %v4497_v53  ;;  %v884_v52 = vshrl.u32 %v4117_v22, 16  ;;  %v887_v53 = vshll.u32 %v4117_v22, 16  ;;  %v895_v5 = vrot.slane %v893_v60, 7  ;;  %v5026_v6 = vrot.slane %v1155_v61, %v4916_v56  ;;  %v4527_v60 = vld [vmem:[%s6437_s1 + $0x260] ss:$8 sps:$4 sm:$0xff]  }
  0x31   :  { %2552 = vmatprep.subr.bf16.mxu1 %v4499_v54  ;;  %v4515_v54 = vld [vmem:[%s6437_s1 + $0x84] ss:$8 sps:$4 sm:$0xff]   ;;  %v412_v63 = vor.u32 %v411_v51, %v408_v44  ;;  %v330_v22 = vcombine.high %v5036_v14, %v5036_v14  ;;  %v436_v51 = vrot.slane %v434_v39, 6 }
  0x32   :  { %v886_v0 = vrot.slane %v884_v52, 6  ;;  %v889_v1 = vrot.slane %v887_v53, 7 }
  0x33   :  { %2440 = vmatpush2.bf16.msra.mxu0 %v4501_v9  ;;  %v420_v9 = vshrl.u32 %v4089_v3, 16 }
  0x34   :  { %2553 = vmatpush2.bf16.msra.mxu1 %v4502_v10  ;;  %2441 = vmatprep.subr.bf16.mxu0 %v4503_v15  ;;  %v413_v10 = vrot.slane %v412_v63, 2  ;;  %v890_v11 = vor.u32 %v889_v1, %v886_v0  ;;  %v423_v15 = vshll.u32 %v4089_v3, 16  ;;  %v448_v63 = vshrl.u32 %v5036_v14, 16  ;;  %v4530_v3 = vld [vmem:[%s6437_s1 + $0x360] ss:$8 sps:$4 sm:$0xff]  }
  0x35   :  { %2554 = vmatprep.subr.bf16.mxu1 %v4505_v20  ;;  %v329_v20 = vcombine.high %v4090_v7, %v4090_v7  ;;  %v422_v33 = vrot.slane %v420_v9, 6  ;;  %v451_v0 = vshll.u32 %v5036_v14, 16  ;;  %v457_v1 = vshll.u32 %v330_v22, 16  ;;  %v4535_v14 = vld [vmem:[%s6437_s1 + $0x254] ss:$8 sps:$4 sm:$0xff]  }
  0x36   :  { %v5053_v25 = vsel %vm4977_vm6, %v413_v10, %v417_v59  ;;  %v891_v26 = vrot.slane %v890_v11, 2  ;;  %v425_v34 = vrot.slane %v423_v15, 7  ;;  %v5099_v59 = vld.sshfl [vmem:[%s6436_s0 + $0x60] sm:$0x5f pattern:$0x76325410] }
  0x37   :  { %2442 = vmatpush2.bf16.msra.mxu0 %v4507_v27  ;;  %v4523_v27 = vld [vmem:[%s6437_s1 + $0x274] ss:$8 sps:$4 sm:$0xff]   ;;  %v1156_v30 = vcombine.low %v5023_v4, %v5053_v25  ;;  %v443_v52 = vshll.u32 %v329_v20, 16  ;;  %v462_v7 = vshrl.u32 %v5044_v17, 16  ;;  %v465_v9 = vshll.u32 %v5044_v17, 16 }
  0x38   :  { %2555 = vmatpush2.bf16.msra.mxu1 %v4508_v32  ;;  %2443 = vmatprep.subr.bf16.mxu0 %v4509_v37  ;;  %v5068_v32 = vrot.slane %v1013_v18, %v4916_v56  ;;  %v5072_v35 = vsel %vm4977_vm6, %v891_v26, %v895_v5  ;;  %v5078_v37 = vrot.slane %v1014_v28, %v4916_v56  ;;  %v5119_v10 = vld.sshfl [vmem:[%s6436_s0 + $0x68] sm:$0x5f pattern:$0x76325410]  ;;  %v450_v12 = vrot.slane %v448_v63, 6 }
  0x39   :  { %2556 = vmatprep.subr.bf16.mxu1 %v4511_v42  ;;  %v1170_v40 = vrot.slane %v1156_v30, %v4916_v56  ;;  %v4524_v42 = vld [vmem:[%s6437_s1 + $0x370] ss:$8 sps:$4 sm:$0xff]   ;;  %v426_v44 = vor.u32 %v425_v34, %v422_v33  ;;  %v445_v61 = vrot.slane %v443_v52, 7  ;;  %v453_v21 = vrot.slane %v451_v0, 7 }
  0x3a   :  { %v471_v11 = vshll.u32 %v331_v29, 16  ;;  %v467_v17 = vrot.slane %v465_v9, 7  ;;  %v1029_v18 = vcombine.low %v5068_v32, %v5078_v37  ;;  %v476_v26 = vshrl.u32 %v5099_v59, 16  ;;  %v4547_v9 = vld [vmem:[%s6437_s1 + $0x234] ss:$8 sps:$4 sm:$0xff]  }
  0x3b   :  { %2444 = vmatpush2.bf16.msra.mxu0 %v4513_v47  ;;  %v1030_v47 = vcombine.high %v5068_v32, %v5078_v37  ;;  %v1172_v53 = vcombine.high %v5026_v6, %v1170_v40  ;;  %v454_v20 = vor.u32 %v453_v21, %v450_v12  ;;  %v5144_v30 = vld.sshfl [vmem:[%s6436_s0 + $0x78] sm:$0x5f pattern:$0x76325410]  ;;  %v332_v32 = vcombine.high %v5099_v59, %v5099_v59 }
  0x3c   :  { %2557 = vmatpush2.bf16.msra.mxu1 %v4514_v49  ;;  %2445 = vmatprep.subr.bf16.mxu0 %v4515_v54  ;;  %v431_v49 = vrot.slane %v429_v38, 7  ;;  %v1171_v54 = vcombine.low %v5026_v6, %v1170_v40  ;;  %v440_v6 = vor.u32 %v439_v57, %v436_v51  ;;  %v473_v22 = vrot.slane %v471_v11, 7  ;;  %v4536_v40 = vld [vmem:[%s6437_s1 + $0x350] ss:$8 sps:$4 sm:$0xff]   ;;  %v4550_v11 = vld [vmem:[%s6437_s1 + $0x334] ss:$8 sps:$4 sm:$0xff]  }
  0x3d   :  { %2558 = vmatprep.subr.bf16.mxu1 %v4517_v55  ;;  %v427_v55 = vrot.slane %v426_v44, 2  ;;  %2560 = vmatprep.mubr.bf16.mxu1 %v1172_v53  ;;  %v455_v33 = vrot.slane %v454_v20, 2  ;;  %v335_v45 = vcombine.high %v5144_v30, %v5144_v30  ;;  %v478_v52 = vrot.slane %v476_v26, 6  ;;  %v4548_v20 = vld [vmem:[%s6437_s1 + $0x330] ss:$8 sps:$4 sm:$0xff]  }
  0x3e   :  { %v441_v15 = vrot.slane %v440_v6, 2  ;;  %v490_v57 = vshrl.u32 %v5119_v10, 16  ;;  %v493_v0 = vshll.u32 %v5119_v10, 16 }
  0x3f   :  { %2446 = vmatpush2.bf16.msra.mxu0 %v4519_v16  ;;  %v432_v5 = vsel %vm4977_vm6, %v427_v55, %v431_v49  ;;  %v464_v16 = vrot.slane %v462_v7, 6  ;;  %v4544_v49 = vld [vmem:[%s6437_s1 + $0x344] ss:$8 sps:$4 sm:$0xff]   ;;  %v485_v55 = vshll.u32 %v332_v32, 16 }
  0x40   :  { %2559 = vmatpush2.bf16.msra.mxu1 %v4520_v24  ;;  %2641 = vmatprep.subr.bf16.mxu0 %v4523_v27  ;;  %v5132_v24 = vld.sshfl [vmem:[%s6436_s0 + $0x70] sm:$0x5f pattern:$0x76325410]  ;;  %v1031_v27 = vcombine.low %v5099_v59, %v5119_v10  ;;  %v5139_v28 = vsel %vm4977_vm6, %v441_v15, %v445_v61  ;;  %v4542_v61 = vld [vmem:[%s6437_s1 + $0x340] ss:$8 sps:$4 sm:$0xff]  }
  0x41   :  { %2754 = vmatprep.subr.bf16.mxu1 %v4526_v31  ;;  %v468_v29 = vor.u32 %v467_v17, %v464_v16  ;;  %v479_v31 = vshll.u32 %v5099_v59, 16  ;;  %v1173_v34 = vcombine.low %v432_v5, %v5139_v28  ;;  %v1032_v37 = vcombine.low %v5132_v24, %v5144_v30 }
  0x42   :  { %2448 = vmatmul.mubr.bf16.vlgmr.msra.gmra.mxu0 %v1011_v2  ;;  %v459_v2 = vrot.slane %v457_v1, 7  ;;  %v5156_v38 = vrot.slane %v1031_v27, %v4916_v56  ;;  %v334_v44 = vcombine.high %v5132_v24, %v5132_v24  ;;  %v487_v5 = vrot.slane %v485_v55, 7 }
  0x43   :  { %2561 = vmatmul.mubr.bf16.vlgmr.msra.gmra.mxu1 %v1171_v54  ;;  %2642 = vmatpush1.bf16.msra.mxu0 %v4521_v36  ;;  %v4533_v36 = vld [vmem:[%s6437_s1 + $0x250] ss:$8 sps:$4 sm:$0xff]   ;;  %v469_v39 = vrot.slane %v468_v29, 2  ;;  %v5179_v51 = vrot.slane %v1032_v37, %v4916_v56  ;;  %v481_v54 = vrot.slane %v479_v31, 7  ;;  %v492_v6 = vrot.slane %v490_v57, 6 }
  0x44   :  { %2755 = vmatpush1.bf16.msra.mxu1 %v4524_v42  ;;  %2643 = vmatprep.subr.bf16.mxu0 %v4529_v43  ;;  %v4541_v42 = vld [vmem:[%s6437_s1 + $0x244] ss:$8 sps:$4 sm:$0xff]   ;;  %v333_v43 = vcombine.high %v5119_v10, %v5119_v10  ;;  %v504_v7 = vshrl.u32 %v5132_v24, 16  ;;  %v495_v21 = vrot.slane %v493_v0, 7  ;;  %v507_v10 = vshll.u32 %v5132_v24, 16 }
  0x45   :  { %2756 = vmatprep.subr.bf16.mxu1 %v4532_v46  ;;  %2457 = vmatprep.mubr.bf16.mxu0 %v1030_v47  ;;  %v5172_v46 = vsel %vm4977_vm6, %v455_v33, %v459_v2  ;;  %v1181_v47 = vrot.slane %v1173_v34, %v4916_v56  ;;  %v5183_v53 = vsel %vm4977_vm6, %v469_v39, %v473_v22  ;;  %v513_v17 = vshll.u32 %v334_v44, 16  ;;  %v4553_v29 = vld [vmem:[%s6437_s1 + $0x224] ss:$8 sps:$4 sm:$0xff]  }
  0x46   :  { %v1174_v59 = vcombine.low %v5172_v46, %v5183_v53  ;;  %v1048_v63 = vcombine.high %v5156_v38, %v5179_v51  ;;  %v499_v1 = vshll.u32 %v333_v43, 16  ;;  %v506_v16 = vrot.slane %v504_v7, 6  ;;  %v5222_v31 = vld.sshfl [vmem:[%s6436_s0 + $0x98] sm:$0x5f pattern:$0x76325410] }
  0x47   :  { %2644 = vmatpush1.bf16.msra.mxu0 %v4527_v60  ;;  %v4539_v60 = vld [vmem:[%s6437_s1 + $0x240] ss:$8 sps:$4 sm:$0xff]   ;;  %v496_v26 = vor.u32 %v495_v21, %v492_v6  ;;  %v509_v27 = vrot.slane %v507_v10, 7  ;;  %v515_v33 = vrot.slane %v513_v17, 7  ;;  %v4556_v37 = vld [vmem:[%s6437_s1 + $0x324] ss:$8 sps:$4 sm:$0xff]   ;;  %v1047_v43 = vcombine.low %v5156_v38, %v5179_v51 }
  0x48   :  { %2757 = vmatpush1.bf16.msra.mxu1 %v4530_v3  ;;  %2645 = vmatprep.subr.bf16.mxu0 %v4535_v14  ;;  %v482_v3 = vor.u32 %v481_v54, %v478_v52  ;;  %v1188_v12 = vrot.slane %v1174_v59, %v4916_v56  ;;  %v501_v2 = vrot.slane %v499_v1, 7  ;;  %v4097_v14 = vld.sshfl [vmem:[%s6436_s0 + $0x90] sm:$0x5f pattern:$0x76325410] }
  0x49   :  { %2758 = vmatprep.subr.bf16.mxu1 %v4538_v19  ;;  %v4545_v19 = vld [vmem:[%s6437_s1 + $0x230] ss:$8 sps:$4 sm:$0xff]   ;;  %v497_v39 = vrot.slane %v496_v26, 2  ;;  %v1049_v52 = vcombine.low %v4097_v14, %v5222_v31  ;;  %v535_v55 = vshll.u32 %v4097_v14, 16  ;;  %v4559_v7 = vld [vmem:[%s6437_s1 + $0x214] ss:$8 sps:$4 sm:$0xff]  }
  0x4a   :  { %2458 = vmatmul.mubr.bf16.gmra.mxu0 %v1029_v18  ;;  %v483_v15 = vrot.slane %v482_v3, 2  ;;  %v518_v18 = vshrl.u32 %v5144_v30, 16  ;;  %v1190_v22 = vcombine.high %v1181_v47, %v1188_v12  ;;  %v1189_v24 = vcombine.low %v1181_v47, %v1188_v12  ;;  %v5235_v44 = vld.sshfl [vmem:[%s6436_s0 + $0xa0] sm:$0x5f pattern:$0x76325410] }
  0x4b   :  { %2646 = vmatpush1.bf16.msra.mxu0 %v4533_v36  ;;  %2467 = vmatprep.mubr.bf16.mxu0 %v1048_v63  ;;  %v521_v36 = vshll.u32 %v5144_v30, 16  ;;  %v5240_v47 = vld.sshfl [vmem:[%s6436_s0 + $0xa8] sm:$0x5f pattern:$0x76325410]  ;;  %v5245_v38 = vsel %vm4977_vm6, %v497_v39, %v501_v2  ;;  %v5261_v3 = vrot.slane %v1049_v52, %v4916_v56  ;;  %v537_v6 = vrot.slane %v535_v55, 7 }
  0x4c   :  { %2759 = vmatpush1.bf16.msra.mxu1 %v4536_v40  ;;  %2647 = vmatprep.subr.bf16.mxu0 %v4541_v42  ;;  %v488_v32 = vsel %vm4977_vm6, %v483_v15, %v487_v5  ;;  %v520_v34 = vrot.slane %v518_v18, 6  ;;  %v510_v40 = vor.u32 %v509_v27, %v506_v16  ;;  %v527_v42 = vshll.u32 %v335_v45, 16  ;;  %v4557_v17 = vld [vmem:[%s6437_s1 + $0x210] ss:$8 sps:$4 sm:$0xff]   ;;  %v4565_v26 = vld [vmem:[%s6437_s1 + $0x204] ss:$8 sps:$4 sm:$0xff]  }
  0x4d   :  { %2760 = vmatprep.subr.bf16.mxu1 %v4544_v49  ;;  %2570 = vmatprep.mubr.bf16.mxu1 %v1190_v22  ;;  %v523_v30 = vrot.slane %v521_v36, 7  ;;  %v532_v49 = vshrl.u32 %v4097_v14, 16  ;;  %v336_v45 = vcombine.high %v4097_v14, %v4097_v14  ;;  %v1191_v59 = vcombine.low %v488_v32, %v5245_v38  ;;  %v4101_v52 = vld.sshfl [vmem:[%s6436_s0 + $0xc0] sm:$0x5f pattern:$0x76325410] }
  0x4e   :  { %2571 = vmatmul.mubr.bf16.gmra.mxu1 %v1189_v24  ;;  %v511_v51 = vrot.slane %v510_v40, 2  ;;  %v529_v54 = vrot.slane %v527_v42, 7  ;;  %v1050_v63 = vcombine.low %v5235_v44, %v5240_v47  ;;  %v337_v5 = vcombine.high %v5222_v31, %v5222_v31  ;;  %v4560_v24 = vld [vmem:[%s6437_s1 + $0x310] ss:$8 sps:$4 sm:$0xff]   ;;  %v4563_v40 = vld [vmem:[%s6437_s1 + $0x200] ss:$8 sps:$4 sm:$0xff]  }
  0x4f   :  { %2648 = vmatpush1.bf16.msra.mxu0 %v4539_v60  ;;  %v524_v57 = vor.u32 %v523_v30, %v520_v34  ;;  %v4551_v60 = vld [vmem:[%s6437_s1 + $0x220] ss:$8 sps:$4 sm:$0xff]   ;;  %v534_v0 = vrot.slane %v532_v49, 6  ;;  %v1199_v21 = vrot.slane %v1191_v59, %v4916_v56  ;;  %v338_v10 = vcombine.high %v5235_v44, %v5235_v44 }
  0x50   :  { %2761 = vmatpush1.bf16.msra.mxu1 %v4542_v61  ;;  %2649 = vmatprep.subr.bf16.mxu0 %v4547_v9  ;;  %v4554_v61 = vld [vmem:[%s6437_s1 + $0x320] ss:$8 sps:$4 sm:$0xff]   ;;  %v5258_v1 = vsel %vm4977_vm6, %v511_v51, %v515_v33  ;;  %v4562_v9 = vld [vmem:[%s6437_s1 + $0x314] ss:$8 sps:$4 sm:$0xff]   ;;  %v5273_v2 = vrot.slane %v1050_v63, %v4916_v56  ;;  %v541_v15 = vshll.u32 %v336_v45, 16  ;;  %v546_v16 = vshrl.u32 %v5222_v31, 16 }
  0x51   :  { %2762 = vmatprep.subr.bf16.mxu1 %v4550_v11  ;;  %v525_v12 = vrot.slane %v524_v57, 2  ;;  %v339_v11 = vcombine.high %v5240_v47, %v5240_v47  ;;  %v538_v14 = vor.u32 %v537_v6, %v534_v0  ;;  %v555_v22 = vshll.u32 %v337_v5, 16  ;;  %v4566_v55 = vld [vmem:[%s6437_s1 + $0x300] ss:$8 sps:$4 sm:$0xff]  }
  0x52   :  { %2468 = vmatmul.mubr.bf16.gmra.mxu0 %v1047_v43  ;;  %v543_v32 = vrot.slane %v541_v15, 7  ;;  %v548_v33 = vrot.slane %v546_v16, 6  ;;  %v563_v39 = vshll.u32 %v5235_v44, 16  ;;  %v569_v30 = vshll.u32 %v338_v10, 16 }
  0x53   :  { %2650 = vmatpush1.bf16.msra.mxu0 %v4545_v19  ;;  %v5285_v18 = vsel %vm4977_vm6, %v525_v12, %v529_v54  ;;  %v1066_v19 = vcombine.high %v5261_v3, %v5273_v2  ;;  %v557_v36 = vrot.slane %v555_v22, 7  ;;  %v574_v49 = vshrl.u32 %v5240_v47, 16  ;;  %v5320_v57 = vld.sshfl [vmem:[%s6436_s0 + $0xc8] sm:$0x5f pattern:$0x76325410] }
  0x54   :  { %2763 = vmatpush1.bf16.msra.mxu1 %v4548_v20  ;;  %2651 = vmatprep.subr.bf16.mxu0 %v4553_v29  ;;  %v549_v20 = vshll.u32 %v5222_v31, 16  ;;  %v1192_v27 = vcombine.low %v5258_v1, %v5285_v18  ;;  %v539_v29 = vrot.slane %v538_v14, 2  ;;  %v4568_v31 = vld [vmem:[%s6437_s1 + $0x304] ss:$8 sps:$4 sm:$0xff]   ;;  %v565_v54 = vrot.slane %v563_v39, 7 }
  0x55   :  { %2764 = vmatprep.subr.bf16.mxu1 %v4556_v37  ;;  %2477 = vmatprep.mubr.bf16.mxu0 %v1066_v19  ;;  %v560_v37 = vshrl.u32 %v5235_v44, 16  ;;  %v577_v44 = vshll.u32 %v5240_v47, 16  ;;  %v576_v63 = vrot.slane %v574_v49, 6  ;;  %v4571_v47 = vld [vmem:[%s6437_s1 + $0x2f4] ss:$8 sps:$4 sm:$0xff]   ;;  %v588_v14 = vshrl.u32 %v4101_v52, 16 }
  0x56   :  { %v551_v34 = vrot.slane %v549_v20, 7  ;;  %v1206_v42 = vrot.slane %v1192_v27, %v4916_v56  ;;  %v544_v43 = vsel %vm4977_vm6, %v539_v29, %v543_v32  ;;  %v4574_v12 = vld [vmem:[%s6437_s1 + $0x3f4] ss:$8 sps:$4 sm:$0xff]   ;;  %v591_v15 = vshll.u32 %v4101_v52, 16  ;;  %v4572_v27 = vld [vmem:[%s6437_s1 + $0x3f0] ss:$8 sps:$4 sm:$0xff]  }
  0x57   :  { %2652 = vmatpush1.bf16.msra.mxu0 %v4551_v60  ;;  %v562_v51 = vrot.slane %v560_v37, 6  ;;  %v579_v6 = vrot.slane %v577_v44, 7  ;;  %v5336_v10 = vld.sshfl [vmem:[%s6436_s0 + $0xd0] sm:$0x5f pattern:$0x76325410] }
  0x58   :  { %2765 = vmatpush1.bf16.msra.mxu1 %v4554_v61  ;;  %2653 = vmatprep.subr.bf16.mxu0 %v4559_v7  ;;  %v552_v45 = vor.u32 %v551_v34, %v548_v33  ;;  %v1208_v59 = vcombine.high %v1199_v21, %v1206_v42  ;;  %v1207_v60 = vcombine.low %v1199_v21, %v1206_v42  ;;  %v571_v61 = vrot.slane %v569_v30, 7  ;;  %v4577_v29 = vld [vmem:[%s6437_s1 + $0x2e4] ss:$8 sps:$4 sm:$0xff]  }
  0x59   :  { %2766 = vmatprep.subr.bf16.mxu1 %v4562_v9  ;;  %v566_v5 = vor.u32 %v565_v54, %v562_v51  ;;  %v583_v7 = vshll.u32 %v339_v11, 16  ;;  %v4569_v9 = vld [vmem:[%s6437_s1 + $0x2f0] ss:$8 sps:$4 sm:$0xff]   ;;  %v1065_v21 = vcombine.low %v5261_v3, %v5273_v2  ;;  %v1067_v11 = vcombine.low %v4101_v52, %v5320_v57  ;;  %v4578_v51 = vld [vmem:[%s6437_s1 + $0x3e0] ss:$8 sps:$4 sm:$0xff]  }
  0x5a   :  { %v553_v0 = vrot.slane %v552_v45, 2  ;;  %2580 = vmatprep.mubr.bf16.mxu1 %v1208_v59  ;;  %v580_v19 = vor.u32 %v579_v6, %v576_v63  ;;  %v5346_v3 = vld.sshfl [vmem:[%s6436_s0 + $0xd8] sm:$0x5f pattern:$0x76325410]  ;;  %v341_v34 = vcombine.high %v5320_v57, %v5320_v57  ;;  %v593_v49 = vrot.slane %v591_v15, 7 }
  0x5b   :  { %2654 = vmatpush1.bf16.msra.mxu0 %v4557_v17  ;;  %2581 = vmatmul.mubr.bf16.gmra.mxu1 %v1207_v60  ;;  %v567_v17 = vrot.slane %v566_v5, 2  ;;  %v585_v20 = vrot.slane %v583_v7, 7  ;;  %v1068_v22 = vcombine.low %v5336_v10, %v5346_v3  ;;  %v343_v42 = vcombine.high %v5346_v3, %v5346_v3  ;;  %v4583_v60 = vld [vmem:[%s6437_s1 + $0x2d4] ss:$8 sps:$4 sm:$0xff]  }
  0x5c   :  { %2767 = vmatpush1.bf16.msra.mxu1 %v4560_v24  ;;  %2655 = vmatprep.subr.bf16.mxu0 %v4565_v26  ;;  %v5341_v16 = vsel %vm4977_vm6, %v553_v0, %v557_v36  ;;  %v5352_v24 = vrot.slane %v1067_v11, %v4916_v56  ;;  %v590_v26 = vrot.slane %v588_v14, 6  ;;  %v581_v33 = vrot.slane %v580_v19, 2  ;;  %v4580_v36 = vld [vmem:[%s6437_s1 + $0x3e4] ss:$8 sps:$4 sm:$0xff]   ;;  %v4586_v5 = vld [vmem:[%s6437_s1 + $0x3d4] ss:$8 sps:$4 sm:$0xff]  }
  0x5d   :  { %2768 = vmatprep.subr.bf16.mxu1 %v4568_v31  ;;  %v1209_v2 = vcombine.low %v544_v43, %v5341_v16  ;;  %2478 = vmatmul.mubr.bf16.gmra.mxu0 %v1065_v21  ;;  %v5362_v32 = vsel %vm4977_vm6, %v567_v17, %v571_v61  ;;  %v340_v31 = vcombine.high %v4101_v52, %v4101_v52  ;;  %v4575_v43 = vld [vmem:[%s6437_s1 + $0x2e0] ss:$8 sps:$4 sm:$0xff]   ;;  %v602_v45 = vshrl.u32 %v5320_v57, 16  ;;  %v4581_v19 = vld [vmem:[%s6437_s1 + $0x2d0] ss:$8 sps:$4 sm:$0xff]  }
  0x5e   :  { %v5371_v39 = vrot.slane %v1068_v22, %v4916_v56  ;;  %v5382_v30 = vsel %vm4977_vm6, %v581_v33, %v585_v20  ;;  %v611_v59 = vshll.u32 %v341_v34, 16  ;;  %v594_v61 = vor.u32 %v593_v49, %v590_v26  ;;  %v5405_v21 = vld.sshfl [vmem:[%s6436_s0 + $0xf0] sm:$0x5f pattern:$0x76325410] }
  0x5f   :  { %2656 = vmatpush1.bf16.msra.mxu0 %v4563_v40  ;;  %v1217_v37 = vrot.slane %v1209_v2, %v4916_v56  ;;  %v342_v40 = vcombine.high %v5336_v10, %v5336_v10  ;;  %v597_v52 = vshll.u32 %v340_v31, 16  ;;  %v1210_v54 = vcombine.low %v5362_v32, %v5382_v30  ;;  %v4589_v33 = vld [vmem:[%s6437_s1 + $0x2c4] ss:$8 sps:$4 sm:$0xff]  }
  0x60   :  { %2769 = vmatpush1.bf16.msra.mxu1 %v4566_v55  ;;  %2657 = vmatprep.subr.bf16.mxu0 %v4571_v47  ;;  %v1084_v44 = vcombine.high %v5352_v24, %v5371_v39  ;;  %v605_v55 = vshll.u32 %v5320_v57, 16  ;;  %v604_v47 = vrot.slane %v602_v45, 6  ;;  %v616_v0 = vshrl.u32 %v5336_v10, 16 }
  0x61   :  { %2770 = vmatprep.subr.bf16.mxu1 %v4574_v12  ;;  %v599_v63 = vrot.slane %v597_v52, 7  ;;  %v1224_v6 = vrot.slane %v1210_v54, %v4916_v56  ;;  %v619_v12 = vshll.u32 %v5336_v10, 16  ;;  %v595_v14 = vrot.slane %v594_v61, 2  ;;  %v4592_v54 = vld [vmem:[%s6437_s1 + $0x3c4] ss:$8 sps:$4 sm:$0xff]  }
  0x62   :  { %2487 = vmatprep.mubr.bf16.mxu0 %v1084_v44  ;;  %v607_v7 = vrot.slane %v605_v55, 7  ;;  %v618_v15 = vrot.slane %v616_v0, 6  ;;  %v625_v11 = vshll.u32 %v342_v40, 16  ;;  %v630_v17 = vshrl.u32 %v5346_v3, 16 }
  0x63   :  { %2658 = vmatpush2.bf16.msra.mxu0 %v4569_v9  ;;  %v613_v9 = vrot.slane %v611_v59, 7  ;;  %v1226_v20 = vcombine.high %v1217_v37, %v1224_v6  ;;  %v1225_v2 = vcombine.low %v1217_v37, %v1224_v6  ;;  %v621_v26 = vrot.slane %v619_v12, 7  ;;  %v5428_v40 = vld.sshfl [vmem:[%s6436_s0 + $0x100] sm:$0x5f pattern:$0x76325410] }
  0x64   :  { %2771 = vmatpush2.bf16.msra.mxu1 %v4572_v27  ;;  %2659 = vmatprep.subr.bf16.mxu0 %v4577_v29  ;;  %v608_v22 = vor.u32 %v607_v7, %v604_v47  ;;  %v5414_v27 = vld.sshfl [vmem:[%s6436_s0 + $0xf8] sm:$0x5f pattern:$0x76325410]  ;;  %v600_v31 = vsel %vm4977_vm6, %v595_v14, %v599_v63  ;;  %v627_v34 = vrot.slane %v625_v11, 7  ;;  %v633_v37 = vshll.u32 %v5346_v3, 16 }
  0x65   :  { %2772 = vmatprep.subr.bf16.mxu1 %v4580_v36  ;;  %v4584_v29 = vld [vmem:[%s6437_s1 + $0x3d0] ss:$8 sps:$4 sm:$0xff]   ;;  %v632_v36 = vrot.slane %v630_v17, 6  ;;  %2590 = vmatprep.mubr.bf16.mxu1 %v1226_v20  ;;  %v622_v52 = vor.u32 %v621_v26, %v618_v15  ;;  %v639_v45 = vshll.u32 %v343_v42, 16  ;;  %v644_v55 = vshrl.u32 %v5405_v21, 16 }
  0x66   :  { %v609_v49 = vrot.slane %v608_v22, 2  ;;  %2591 = vmatmul.mubr.bf16.gmra.mxu1 %v1225_v2  ;;  %v635_v44 = vrot.slane %v633_v37, 7  ;;  %v647_v59 = vshll.u32 %v5405_v21, 16  ;;  %v4587_v42 = vld [vmem:[%s6437_s1 + $0x2c0] ss:$8 sps:$4 sm:$0xff]   ;;  %v344_v7 = vcombine.high %v5405_v21, %v5405_v21 }
  0x67   :  { %2660 = vmatpush2.bf16.msra.mxu0 %v4575_v43  ;;  %v5433_v43 = vld.sshfl [vmem:[%s6436_s0 + $0x108] sm:$0x5f pattern:$0x76325410]  ;;  %v641_v61 = vrot.slane %v639_v45, 7  ;;  %v345_v15 = vcombine.high %v5414_v27, %v5414_v27  ;;  %v346_v11 = vcombine.high %v5428_v40, %v5428_v40  ;;  %v646_v2 = vrot.slane %v644_v55, 6 }
  0x68   :  { %2773 = vmatpush2.bf16.msra.mxu1 %v4578_v51  ;;  %2661 = vmatprep.subr.bf16.mxu0 %v4583_v60  ;;  %v1083_v51 = vcombine.low %v5352_v24, %v5371_v39  ;;  %v1085_v60 = vcombine.low %v5405_v21, %v5414_v27  ;;  %v5449_v24 = vsel %vm4977_vm6, %v609_v49, %v613_v9  ;;  %v623_v39 = vrot.slane %v622_v52, 2  ;;  %v4590_v47 = vld [vmem:[%s6437_s1 + $0x3c0] ss:$8 sps:$4 sm:$0xff]   ;;  %v4595_v9 = vld [vmem:[%s6437_s1 + $0x2b4] ss:$8 sps:$4 sm:$0xff]  }
  0x69   :  { %2774 = vmatprep.subr.bf16.mxu1 %v4586_v5  ;;  %v1086_v63 = vcombine.low %v5428_v40, %v5433_v43  ;;  %v636_v0 = vor.u32 %v635_v44, %v632_v36  ;;  %v1227_v5 = vcombine.low %v600_v31, %v5449_v24  ;;  %v4593_v21 = vld [vmem:[%s6437_s1 + $0x2b0] ss:$8 sps:$4 sm:$0xff]   ;;  %v347_v20 = vcombine.high %v5433_v43, %v5433_v43  ;;  %v4598_v22 = vld [vmem:[%s6437_s1 + $0x3b4] ss:$8 sps:$4 sm:$0xff]   ;;  %v4601_v45 = vld [vmem:[%s6437_s1 + $0x2a4] ss:$8 sps:$4 sm:$0xff]  }
  0x6a   :  { %2488 = vmatmul.mubr.bf16.gmra.mxu0 %v1083_v51  ;;  %v5458_v6 = vrot.slane %v1085_v60, %v4916_v56  ;;  %v5467_v12 = vsel %vm4977_vm6, %v623_v39, %v627_v34  ;;  %v658_v31 = vshrl.u32 %v5414_v27, 16  ;;  %v4596_v34 = vld [vmem:[%s6437_s1 + $0x3b0] ss:$8 sps:$4 sm:$0xff]   ;;  %v661_v37 = vshll.u32 %v5414_v27, 16  ;;  %v4604_v60 = vld [vmem:[%s6437_s1 + $0x3a4] ss:$8 sps:$4 sm:$0xff]  }
  0x6b   :  { %2662 = vmatpush2.bf16.msra.mxu0 %v4581_v19  ;;  %v5470_v14 = vrot.slane %v1086_v63, %v4916_v56  ;;  %v637_v17 = vrot.slane %v636_v0, 2  ;;  %v5480_v19 = vrot.slane %v1227_v5, %v4916_v56  ;;  %v667_v49 = vshll.u32 %v345_v15, 16  ;;  %v4602_v15 = vld [vmem:[%s6437_s1 + $0x3a0] ss:$8 sps:$4 sm:$0xff]  }
  0x6c   :  { %2775 = vmatpush2.bf16.msra.mxu1 %v4584_v29  ;;  %2663 = vmatprep.subr.bf16.mxu0 %v4589_v33  ;;  %v649_v29 = vrot.slane %v647_v59, 7  ;;  %v653_v33 = vshll.u32 %v344_v7, 16  ;;  %v672_v52 = vshrl.u32 %v5428_v40, 16  ;;  %v660_v55 = vrot.slane %v658_v31, 6  ;;  %v4599_v59 = vld [vmem:[%s6437_s1 + $0x2a0] ss:$8 sps:$4 sm:$0xff]  }
  0x6d   :  { %2776 = vmatprep.subr.bf16.mxu1 %v4592_v54  ;;  %v1102_v26 = vcombine.high %v5458_v6, %v5470_v14  ;;  %v5495_v36 = vsel %vm4977_vm6, %v637_v17, %v641_v61  ;;  %v669_v39 = vrot.slane %v667_v49, 7  ;;  %v675_v63 = vshll.u32 %v5428_v40, 16 }
  0x6e   :  { %v1228_v51 = vcombine.low %v5467_v12, %v5495_v36  ;;  %v650_v54 = vor.u32 %v649_v29, %v646_v2  ;;  %v655_v44 = vrot.slane %v653_v33, 7  ;;  %v674_v61 = vrot.slane %v672_v52, 6 }
  0x6f   :  { %2664 = vmatpush2.bf16.msra.mxu0 %v4587_v42  ;;  %2497 = vmatprep.mubr.bf16.mxu0 %v1102_v26  ;;  %v663_v42 = vrot.slane %v661_v37, 7  ;;  %v681_v7 = vshll.u32 %v346_v11, 16  ;;  %v677_v2 = vrot.slane %v675_v63, 7  ;;  %v695_v26 = vshll.u32 %v347_v20, 16  ;;  %v4605_v20 = vld [vmem:[%s6437_s1 + $0x290] ss:$8 sps:$4 sm:$0xff]  }
  0x70   :  { %2777 = vmatpush2.bf16.msra.mxu1 %v4590_v47  ;;  %2665 = vmatprep.subr.bf16.mxu0 %v4595_v9  ;;  %v5514_v47 = vld.sshfl [vmem:[%s6436_s0 + $0x120] sm:$0x5f pattern:$0x76325410]  ;;  %v1242_v0 = vrot.slane %v1228_v51, %v4916_v56  ;;  %v651_v5 = vrot.slane %v650_v54, 2  ;;  %v686_v9 = vshrl.u32 %v5433_v43, 16 }
  0x71   :  { %2778 = vmatprep.subr.bf16.mxu1 %v4598_v22  ;;  %v664_v17 = vor.u32 %v663_v42, %v660_v55  ;;  %v689_v22 = vshll.u32 %v5433_v43, 16  ;;  %v683_v31 = vrot.slane %v681_v7, 7  ;;  %v678_v49 = vor.u32 %v677_v2, %v674_v61  ;;  %v4608_v51 = vld [vmem:[%s6437_s1 + $0x390] ss:$8 sps:$4 sm:$0xff]   ;;  %v4610_v42 = vld [vmem:[%s6437_s1 + $0x394] ss:$8 sps:$4 sm:$0xff]  }
  0x72   :  { %v1244_v11 = vcombine.high %v5480_v19, %v1242_v0  ;;  %v1243_v29 = vcombine.low %v5480_v19, %v1242_v0  ;;  %v656_v33 = vsel %vm4977_vm6, %v651_v5, %v655_v44  ;;  %v688_v52 = vrot.slane %v686_v9, 6  ;;  %v5540_v19 = vld.sshfl [vmem:[%s6436_s0 + $0x130] sm:$0x5f pattern:$0x76325410] }
  0x73   :  { %2666 = vmatpush2.bf16.msra.mxu0 %v4593_v21  ;;  %v4607_v21 = vld [vmem:[%s6437_s1 + $0x294] ss:$8 sps:$4 sm:$0xff]   ;;  %v665_v37 = vrot.slane %v664_v17, 2  ;;  %v697_v54 = vrot.slane %v695_v26, 7  ;;  %v1101_v44 = vcombine.low %v5458_v6, %v5470_v14  ;;  %v700_v55 = vshrl.u32 %v5514_v47, 16 }
  0x74   :  { %2779 = vmatpush2.bf16.msra.mxu1 %v4596_v34  ;;  %2667 = vmatprep.subr.bf16.mxu0 %v4601_v45  ;;  %v5532_v34 = vld.sshfl [vmem:[%s6436_s0 + $0x128] sm:$0x5f pattern:$0x76325410]  ;;  %v691_v45 = vrot.slane %v689_v22, 7  ;;  %v679_v61 = vrot.slane %v678_v49, 2  ;;  %v350_v2 = vcombine.high %v5540_v19, %v5540_v19 }
  0x75   :  { %2780 = vmatprep.subr.bf16.mxu1 %v4604_v60  ;;  %2600 = vmatprep.mubr.bf16.mxu1 %v1244_v11  ;;  %v703_v60 = vshll.u32 %v5514_v47, 16  ;;  %v5559_v6 = vld.sshfl [vmem:[%s6436_s0 + $0x138] sm:$0x5f pattern:$0x76325410]  ;;  %v1103_v14 = vcombine.low %v5514_v47, %v5532_v34  ;;  %v349_v7 = vcombine.high %v5532_v34, %v5532_v34  ;;  %v702_v11 = vrot.slane %v700_v55, 6 }
  0x76   :  { %2601 = vmatmul.mubr.bf16.gmra.mxu1 %v1243_v29  ;;  %v692_v63 = vor.u32 %v691_v45, %v688_v52  ;;  %2498 = vmatmul.mubr.bf16.gmra.mxu0 %v1101_v44  ;;  %v1104_v5 = vcombine.low %v5540_v19, %v5559_v6  ;;  %v5572_v9 = vsel %vm4977_vm6, %v679_v61, %v683_v31  ;;  %v4613_v29 = vld [vmem:[%s6437_s1 + $0x284] ss:$8 sps:$4 sm:$0xff]   ;;  %v714_v49 = vshrl.u32 %v5532_v34, 16 }
  0x77   :  { %2668 = vmatpush2.bf16.msra.mxu0 %v4599_v59  ;;  %v5554_v59 = vsel %vm4977_vm6, %v665_v37, %v669_v39  ;;  %v348_v39 = vcombine.high %v5514_v47, %v5514_v47  ;;  %v5575_v17 = vrot.slane %v1103_v14, %v4916_v56  ;;  %v4611_v47 = vld [vmem:[%s6437_s1 + $0x280] ss:$8 sps:$4 sm:$0xff]   ;;  %v4616_v52 = vld [vmem:[%s6437_s1 + $0x384] ss:$8 sps:$4 sm:$0xff]   ;;  %v717_v44 = vshll.u32 %v5532_v34, 16 }
  0x78   :  { %2781 = vmatpush2.bf16.msra.mxu1 %v4602_v15  ;;  %2669 = vmatprep.subr.bf16.mxu0 %v4607_v21  ;;  %v1245_v0 = vcombine.low %v656_v33, %v5554_v59  ;;  %v693_v15 = vrot.slane %v692_v63, 2  ;;  %v1118_v26 = vrot.slane %v1104_v5, %v4916_v56  ;;  %v351_v21 = vcombine.high %v5559_v6, %v5559_v6  ;;  %v4614_v33 = vld [vmem:[%s6437_s1 + $0x380] ss:$8 sps:$4 sm:$0xff]  }
  0x79   :  { %2782 = vmatprep.subr.bf16.mxu1 %v4610_v42  ;;  %v709_v37 = vshll.u32 %v348_v39, 16  ;;  %v723_v55 = vshll.u32 %v349_v7, 16  ;;  %v716_v61 = vrot.slane %v714_v49, 6  ;;  %v719_v14 = vrot.slane %v717_v44, 7 }
  0x7a   :  { %v1253_v22 = vrot.slane %v1245_v0, %v4916_v56  ;;  %v5594_v31 = vsel %vm4977_vm6, %v693_v15, %v697_v54  ;;  %v731_v5 = vshll.u32 %v5540_v19, 16  ;;  %v4113_v39 = vld.sshfl [vmem:[%s6436_s0 + $0x150] sm:$0x5f pattern:$0x76325410] }
  0x7b   :  { %2670 = vmatpush2.bf16.msra.mxu0 %v4605_v20  ;;  %v705_v20 = vrot.slane %v703_v60, 7  ;;  %v1246_v45 = vcombine.low %v5572_v9, %v5594_v31  ;;  %v711_v54 = vrot.slane %v709_v37, 7  ;;  %v728_v60 = vshrl.u32 %v5540_v19, 16 }
  0x7c   :  { %2783 = vmatpush2.bf16.msra.mxu1 %v4608_v51  ;;  %v1120_v51 = vcombine.high %v5575_v17, %v1118_v26  ;;  %2671 = vmatprep.subr.bf16.mxu0 %v4613_v29  ;;  %v725_v0 = vrot.slane %v723_v55, 7  ;;  %v742_v29 = vshrl.u32 %v5559_v6, 16  ;;  %v733_v49 = vrot.slane %v731_v5, 7 }
  0x7d   :  { %v706_v42 = vor.u32 %v705_v20, %v702_v11  ;;  %2784 = vmatprep.subr.bf16.mxu1 %v4616_v52  ;;  %v1260_v63 = vrot.slane %v1246_v45, %v4916_v56  ;;  %v730_v15 = vrot.slane %v728_v60, 6  ;;  %v737_v11 = vshll.u32 %v350_v2, 16  ;;  %v5614_v52 = vld.sshfl [vmem:[%s6436_s0 + $0x158] sm:$0x5f pattern:$0x76325410] }
  0x7e   :  { %2507 = vmatprep.mubr.bf16.mxu0 %v1120_v51  ;;  %6456 = vst [vmem:[#allocation6_spill] sm:$0xff] %v5614_v52  ;;  %v744_v44 = vrot.slane %v742_v29, 6  ;;  %v5622_v2 = vld.sshfl [vmem:[%s6436_s0 + $0x160] sm:$0x5f pattern:$0x76325410]  ;;  %v1121_v5 = vcombine.low %v4113_v39, %v5614_v52 }
  0x7f   :  { %2672 = vmatpush2.bf16.msra.mxu0 %v4611_v47  ;;  %v707_v7 = vrot.slane %v706_v42, 2  ;;  %v1262_v20 = vcombine.high %v1253_v22, %v1260_v63  ;;  %v1261_v37 = vcombine.low %v1253_v22, %v1260_v63  ;;  %v720_v47 = vor.u32 %v719_v14, %v716_v61  ;;  %v5628_v60 = vld.sshfl [vmem:[%s6436_s0 + $0x168] sm:$0x5f pattern:$0x76325410] }
  0x80   :  { %2785 = vmatpush2.bf16.msra.mxu1 %v4614_v33  ;;  %v739_v51 = vrot.slane %v737_v11, 7  ;;  %v745_v33 = vshll.u32 %v5559_v6, 16  ;;  %v734_v55 = vor.u32 %v733_v49, %v730_v15  ;;  %v751_v42 = vshll.u32 %v351_v21, 16 }
  0x81   :  { %v712_v45 = vsel %vm4977_vm6, %v707_v7, %v711_v54  ;;  %2610 = vmatprep.mubr.bf16.mxu1 %v1262_v20  ;;  %v721_v22 = vrot.slane %v720_v47, 2  ;;  %v1119_v61 = vcombine.low %v5575_v17, %v1118_v26  ;;  %v756_v63 = vshrl.u32 %v4113_v39, 16 }
  0x82   :  { %2611 = vmatmul.mubr.bf16.gmra.mxu1 %v1261_v37  ;;  %v747_v54 = vrot.slane %v745_v33, 7  ;;  %v759_v14 = vshll.u32 %v4113_v39, 16  ;;  %v735_v11 = vrot.slane %v734_v55, 2  ;;  %v753_v15 = vrot.slane %v751_v42, 7 }
  0x83   :  { %v5633_v7 = vsel %vm4977_vm6, %v721_v22, %v725_v0  ;;  %2508 = vmatmul.mubr.bf16.gmra.mxu0 %v1119_v61  ;;  %v1122_v17 = vcombine.low %v5622_v2, %v5628_v60  ;;  %v1129_v29 = vrot.slane %v1121_v5, %v4916_v56  ;;  %v352_v20 = vcombine.high %v4113_v39, %v4113_v39 }
  0x84   :  { %6457 = vst [vmem:[#allocation7_spill] sm:$0xff] %v5633_v7  ;;  %v748_v26 = vor.u32 %v747_v54, %v744_v44  ;;  %v1263_v21 = vcombine.low %v712_v45, %v5633_v7  ;;  %v5641_v37 = vsel %vm4977_vm6, %v735_v11, %v739_v51  ;;  %v353_v0 = vcombine.high %v5614_v52, %v5614_v52 }
  0x85   :  { %v1136_v47 = vrot.slane %v1122_v17, %v4916_v56  ;;  %v354_v49 = vcombine.high %v5622_v2, %v5622_v2  ;;  %v355_v45 = vcombine.high %v5628_v60, %v5628_v60  ;;  %v758_v22 = vrot.slane %v756_v63, 6 }
  0x86   :  { %v749_v33 = vrot.slane %v748_v26, 2  ;;  %v1271_v44 = vrot.slane %v1263_v21, %v4916_v56  ;;  %v761_v55 = vrot.slane %v759_v14, 7  ;;  %v765_v42 = vshll.u32 %v352_v20, 16 }
  0x87   :  { %v1138_v39 = vcombine.high %v1129_v29, %v1136_v47  ;;  %v770_v51 = vshrl.u32 %v5614_v52, 16  ;;  %v773_v54 = vshll.u32 %v5614_v52, 16  ;;  %v779_v5 = vshll.u32 %v353_v0, 16 }
  0x88   :  { %v5654_v61 = vsel %vm4977_vm6, %v749_v33, %v753_v15  ;;  %v784_v11 = vshrl.u32 %v5622_v2, 16  ;;  %v762_v26 = vor.u32 %v761_v55, %v758_v22  ;;  %v767_v63 = vrot.slane %v765_v42, 7  ;;  %v4118_v22 = vld.sshfl [vmem:[%s6436_s0 + $0x50] sm:$0x5f pattern:$0x76325410] }
  0x89   :  { %6458 = vst [vmem:[#allocation8_spill] sm:$0xff] %v5654_v61  ;;  %v1264_v17 = vcombine.low %v5641_v37, %v5654_v61  ;;  %2517 = vmatprep.mubr.bf16.mxu0 %v1138_v39  ;;  %v772_v21 = vrot.slane %v770_v51, 6  ;;  %v775_v14 = vrot.slane %v773_v54, 7  ;;  %v781_v20 = vrot.slane %v779_v5, 7 }
  0x8a   :  { %v786_v41 = vrot.slane %v784_v11, 6  ;;  %v787_v13 = vshll.u32 %v5622_v2, 16  ;;  %v763_v33 = vrot.slane %v762_v26, 2  ;;  %v793_v8 = vshll.u32 %v354_v49, 16 }
  0x8b   :  { %v1278_v15 = vrot.slane %v1264_v17, %v4916_v56  ;;  %v798_v0 = vshrl.u32 %v5628_v60, 16  ;;  %v776_v48 = vor.u32 %v775_v14, %v772_v21  ;;  %v801_v52 = vshll.u32 %v5628_v60, 16  ;;  %v4684_v26 = vld.sshfl [vmem:[%s6436_s0 + $0x20] sm:$0x5f pattern:$0x76325410] }
  0x8c   :  { %v789_v7 = vrot.slane %v787_v13, 7  ;;  %v807_v61 = vshll.u32 %v355_v45, 16  ;;  %v768_v42 = vsel %vm4977_vm6, %v763_v33, %v767_v63  ;;  %v795_v51 = vrot.slane %v793_v8, 7 }
  0x8d   :  { %v1280_v39 = vcombine.high %v1271_v44, %v1278_v15  ;;  %v1279_v55 = vcombine.low %v1271_v44, %v1278_v15  ;;  %v777_v54 = vrot.slane %v776_v48, 2  ;;  %v800_v49 = vrot.slane %v798_v0, 6  ;;  %v4683_v45 = vld.sshfl [vmem:[%s6436_s0 + $0x18] sm:$0x5f pattern:$0x76325410] }
  0x8e   :  { %v790_v5 = vor.u32 %v789_v7, %v786_v41  ;;  %v803_v11 = vrot.slane %v801_v52, 7  ;;  %v809_v17 = vrot.slane %v807_v61, 7  ;;  %v1137_v13 = vcombine.low %v1129_v29, %v1136_v47  ;;  %v4119_v14 = vld.sshfl [vmem:[%s6436_s0 + $0x80] sm:$0x5f pattern:$0x76325410] }
  0x8f   :  { %2620 = vmatprep.mubr.bf16.mxu1 %v1280_v39  ;;  %v1316_v44 = vcombine.low %v4683_v45, %v4684_v26  ;;  %v6459_v8 = vcombine.low %v4926_v58, %v4931_v62  ;;  %v5681_v41 = vsel %vm4977_vm6, %v777_v54, %v781_v20  ;;  %v6460_v29 = vcombine.low %v5007_v50, %v5023_v4  ;;  %v4685_v15 = vld.sshfl [vmem:[%s6436_s0 + $0x38] sm:$0x5f pattern:$0x76325410] }
  0x90   :  { %2621 = vmatmul.mubr.bf16.gmra.mxu1 %v1279_v55  ;;  %v791_v52 = vrot.slane %v790_v5, 2  ;;  %v804_v7 = vor.u32 %v803_v11, %v800_v49  ;;  %v1281_v61 = vcombine.low %v768_v42, %v5681_v41  ;;  %2518 = vmatmul.mubr.bf16.gmra.mxu0 %v1137_v13  ;;  %v6461_v58 = vcombine.low %v5053_v25, %v5072_v35  ;;  %v4686_v25 = vld.sshfl [vmem:[%s6436_s0 + $0x40] sm:$0x5f pattern:$0x76325410] }
  0x91   :  { %v1323_v48 = vrot.slane %v6459_v8, %v4916_v56  ;;  %v5687_v47 = vrot.slane %v6460_v29, %v4916_v56  ;;  %v1330_v63 = vrot.slane %v1316_v44, %v4916_v56  ;;  %v898_v21 = vshrl.u32 %v4118_v22, 16  ;;  %v4687_v54 = vld.sshfl [vmem:[%s6436_s0 + $0x48] sm:$0x5f pattern:$0x76325410] }
  0x92   :  { %v5695_v62 = vrot.slane %v6461_v58, %v4916_v56  ;;  %v5702_v50 = vsel %vm4977_vm6, %v791_v52, %v795_v51  ;;  %v805_v4 = vrot.slane %v804_v7, 2  ;;  %v901_v20 = vshll.u32 %v4118_v22, 16 }
  0x93   :  { %v1333_v35 = vcombine.low %v4685_v15, %v4686_v25  ;;  %v1289_v33 = vrot.slane %v1281_v61, %v4916_v56  ;;  %v1331_v0 = vcombine.low %v1323_v48, %v1330_v63  ;;  %v1332_v39 = vcombine.high %v1323_v48, %v1330_v63  ;;  %v4120_v48 = vld.sshfl [vmem:[%s6436_s0 + $0xb0] sm:$0x5f pattern:$0x76325410] }
  0x94   :  { %v1491_v55 = vcombine.low %v5687_v47, %v5695_v62  ;;  %v5715_v42 = vsel %vm4977_vm6, %v805_v4, %v809_v17  ;;  %v1492_v51 = vcombine.high %v5687_v47, %v5695_v62  ;;  %v1334_v5 = vcombine.low %v4687_v54, %v4118_v22  ;;  %v4688_v61 = vld.sshfl [vmem:[%s6436_s0 + $0x68] sm:$0x5f pattern:$0x76325410] }
  0x95   :  { %v1341_v49 = vrot.slane %v1333_v35, %v4916_v56  ;;  %v1282_v11 = vcombine.low %v5702_v50, %v5715_v42  ;;  %2673 = vmatprep.mubr.bf16.mxu0 %v1332_v39  ;;  %v876_v13 = vcombine.high %v4118_v22, %v4118_v22  ;;  %v900_v45 = vrot.slane %v898_v21, 6  ;;  %v4689_v22 = vld.sshfl [vmem:[%s6436_s0 + $0x70] sm:$0x5f pattern:$0x76325410] }
  0x96   :  { %v903_v26 = vrot.slane %v901_v20, 7  ;;  %v1348_v17 = vrot.slane %v1334_v5, %v4916_v56  ;;  %v912_v44 = vshrl.u32 %v4119_v14, 16  ;;  %v915_v8 = vshll.u32 %v4119_v14, 16 }
  0x97   :  { %v1296_v52 = vrot.slane %v1282_v11, %v4916_v56  ;;  %v907_v29 = vshll.u32 %v876_v13, 16  ;;  %v1351_v63 = vcombine.low %v4688_v61, %v4689_v22  ;;  %v1493_v21 = vcombine.low %v5139_v28, %v5172_v46  ;;  %v4690_v4 = vld.sshfl [vmem:[%s6436_s0 + $0x78] sm:$0x5f pattern:$0x76325410] }
  0x98   :  { %v904_v7 = vor.u32 %v903_v26, %v900_v45  ;;  %v1350_v58 = vcombine.high %v1341_v49, %v1348_v17  ;;  %v1352_v20 = vcombine.low %v4690_v4, %v4119_v14  ;;  %2674 = vmatmul.mubr.bf16.vlgmr.msra.gmra.mxu0 %v1331_v0  ;;  %v877_v11 = vcombine.high %v4119_v14, %v4119_v14 }
  0x99   :  { %v1298_v15 = vcombine.high %v1289_v33, %v1296_v52  ;;  %v1297_v25 = vcombine.low %v1289_v33, %v1296_v52  ;;  %v909_v39 = vrot.slane %v907_v29, 7  ;;  %v5742_v54 = vrot.slane %v1351_v63, %v4916_v56 }
  0x9a   :  { %v905_v35 = vrot.slane %v904_v7, 2  ;;  %2683 = vmatprep.mubr.bf16.mxu0 %v1350_v58  ;;  %v5745_v5 = vrot.slane %v1352_v20, %v4916_v56  ;;  %v914_v13 = vrot.slane %v912_v44, 6  ;;  %v917_v46 = vrot.slane %v915_v8, 7 }
  0x9b   :  { %2630 = vmatprep.mubr.bf16.mxu1 %v1298_v15  ;;  %v926_v45 = vshrl.u32 %v4120_v48, 16  ;;  %v5751_v0 = vrot.slane %v1493_v21, %v4916_v56  ;;  %v1349_v26 = vcombine.low %v1341_v49, %v1348_v17  ;;  %v921_v52 = vshll.u32 %v877_v11, 16  ;;  %v4121_v7 = vld.sshfl [vmem:[%s6436_s0 + $0xe0] sm:$0x5f pattern:$0x76325410] }
  0x9c   :  { %v910_v28 = vsel %vm4977_vm6, %v905_v35, %v909_v39  ;;  %2631 = vmatmul.mubr.bf16.gmra.mxu1 %v1297_v25  ;;  %v1368_v14 = vcombine.high %v5742_v54, %v5745_v5  ;;  %v918_v44 = vor.u32 %v917_v46, %v914_v13  ;;  %v929_v29 = vshll.u32 %v4120_v48, 16  ;;  %v4691_v8 = vld.sshfl [vmem:[%s6436_s0 + $0x98] sm:$0x5f pattern:$0x76325410] }
  0x9d   :  { %v1494_v33 = vcombine.low %v5183_v53, %v910_v28  ;;  %2786 = vmatprep.mubr.bf16.mxu1 %v1492_v51  ;;  %v4692_v53 = vld.sshfl [vmem:[%s6436_s0 + $0xa0] sm:$0x5f pattern:$0x76325410]  ;;  %v923_v61 = vrot.slane %v921_v52, 7  ;;  %v878_v63 = vcombine.high %v4120_v48, %v4120_v48  ;;  %v1511_v21 = vcombine.low %v5245_v38, %v5258_v1 }
  0x9e   :  { %v1369_v49 = vcombine.low %v4691_v8, %v4692_v53  ;;  %v4693_v51 = vld.sshfl [vmem:[%s6436_s0 + $0xa8] sm:$0x5f pattern:$0x76325410]  ;;  %v919_v58 = vrot.slane %v918_v44, 2  ;;  %v928_v4 = vrot.slane %v926_v45, 6  ;;  %v1367_v15 = vcombine.low %v5742_v54, %v5745_v5 }
  0x9f   :  { %v5765_v17 = vrot.slane %v1494_v33, %v4916_v56  ;;  %v1370_v22 = vcombine.low %v4693_v51, %v4120_v48  ;;  %v931_v20 = vrot.slane %v929_v29, 7  ;;  %v935_v35 = vshll.u32 %v878_v63, 16  ;;  %v4122_v28 = vld.sshfl [vmem:[%s6436_s0 + $0x110] sm:$0x5f pattern:$0x76325410] }
  0xa0   :  { %v5775_v25 = vrot.slane %v1369_v49, %v4916_v56  ;;  %2684 = vmatmul.mubr.bf16.gmra.mxu0 %v1349_v26  ;;  %v924_v48 = vsel %vm4977_vm6, %v919_v58, %v923_v61  ;;  %v940_v13 = vshrl.u32 %v4121_v7, 16  ;;  %v1529_v5 = vcombine.low %v5341_v16, %v5362_v32 }
  0xa1   :  { %v1510_v39 = vcombine.high %v5751_v0, %v5765_v17  ;;  %v932_v11 = vor.u32 %v931_v20, %v928_v4  ;;  %2693 = vmatprep.mubr.bf16.mxu0 %v1368_v14  ;;  %v1512_v38 = vcombine.low %v5285_v18, %v924_v48  ;;  %v5783_v1 = vrot.slane %v1370_v22, %v4916_v56 }
  0xa2   :  { %v937_v54 = vrot.slane %v935_v35, 7  ;;  %v5791_v46 = vrot.slane %v1511_v21, %v4916_v56  ;;  %v943_v33 = vshll.u32 %v4121_v7, 16  ;;  %v1387_v26 = vcombine.low %v5320_v57, %v5336_v10 }
  0xa3   :  { %v933_v45 = vrot.slane %v932_v11, 2  ;;  %v5799_v18 = vrot.slane %v1512_v38, %v4916_v56  ;;  %v1388_v16 = vcombine.low %v5346_v3, %v4121_v7  ;;  %v879_v32 = vcombine.high %v4121_v7, %v4121_v7 }
  0xa4   :  { %2787 = vmatmul.mubr.bf16.vlgmr.msra.gmra.mxu1 %v1491_v55  ;;  %v942_v52 = vrot.slane %v940_v13, 6  ;;  %v1509_v14 = vcombine.low %v5751_v0, %v5765_v17  ;;  %v945_v29 = vrot.slane %v943_v33, 7  ;;  %v1547_v57 = vcombine.low %v5449_v24, %v5467_v12  ;;  %v4123_v24 = vld.sshfl [vmem:[%s6436_s0 + $0x140] sm:$0x5f pattern:$0x76325410] }
  0xa5   :  { %2796 = vmatprep.mubr.bf16.mxu1 %v1510_v39  ;;  %v938_v44 = vsel %vm4977_vm6, %v933_v45, %v937_v54  ;;  %v1386_v10 = vcombine.high %v5775_v25, %v5783_v1  ;;  %v5812_v3 = vrot.slane %v1529_v5, %v4916_v56  ;;  %v1385_v62 = vcombine.low %v5775_v25, %v5783_v1  ;;  %v4124_v1 = vld.sshfl [vmem:[%s6436_s0 + $0x170] sm:$0x5f pattern:$0x76325410] }
  0xa6   :  { %v1530_v47 = vcombine.low %v5382_v30, %v938_v44  ;;  %v5817_v55 = vrot.slane %v1387_v26, %v4916_v56  ;;  %v946_v0 = vor.u32 %v945_v29, %v942_v52  ;;  %v949_v7 = vshll.u32 %v879_v32, 16 }
  0xa7   :  { %v954_v8 = vshrl.u32 %v4122_v28, 16  ;;  %v1528_v12 = vcombine.high %v5791_v46, %v5799_v18  ;;  %v1527_v30 = vcombine.low %v5791_v46, %v5799_v18  ;;  %v5827_v53 = vrot.slane %v1388_v16, %v4916_v56 }
  0xa8   :  { %v957_v49 = vshll.u32 %v4122_v28, 16  ;;  %2694 = vmatmul.mubr.bf16.gmra.mxu0 %v1367_v15  ;;  %v947_v17 = vrot.slane %v946_v0, 2  ;;  %v951_v61 = vrot.slane %v949_v7, 7  ;;  %v1405_v51 = vcombine.low %v5414_v27, %v5428_v40 }
  0xa9   :  { %v1406_v22 = vcombine.low %v5433_v43, %v4122_v28  ;;  %2703 = vmatprep.mubr.bf16.mxu0 %v1386_v10  ;;  %v5833_v63 = vrot.slane %v1530_v47, %v4916_v56  ;;  %v5836_v58 = vrot.slane %v1547_v57, %v4916_v56  ;;  %v880_v21 = vcombine.high %v4122_v28, %v4122_v28 }
  0xaa   :  { %v956_v4 = vrot.slane %v954_v8, 6  ;;  %v952_v20 = vsel %vm4977_vm6, %v947_v17, %v951_v61  ;;  %v5841_v15 = vrot.slane %v1405_v51, %v4916_v56  ;;  %v959_v27 = vrot.slane %v957_v49, 7 }
  0xab   :  { %v5844_v25 = vrot.slane %v1406_v22, %v4916_v56  ;;  %v1548_v40 = vcombine.low %v5495_v36, %v952_v20  ;;  %v963_v43 = vshll.u32 %v880_v21, 16  ;;  %v1565_v35 = vcombine.low %v5554_v59, %v5572_v9 }
  0xac   :  { %2797 = vmatmul.mubr.bf16.gmra.mxu1 %v1509_v14  ;;  %v968_v39 = vshrl.u32 %v4123_v24, 16  ;;  %v960_v11 = vor.u32 %v959_v27, %v956_v4  ;;  %v971_v38 = vshll.u32 %v4123_v24, 16  ;;  %v1404_v36 = vcombine.high %v5817_v55, %v5827_v53 }
  0xad   :  { %2806 = vmatprep.mubr.bf16.mxu1 %v1528_v12  ;;  %v1422_v48 = vcombine.high %v5841_v15, %v5844_v25  ;;  %v1421_v13 = vcombine.low %v5841_v15, %v5844_v25  ;;  %v1562_v54 = vrot.slane %v1548_v40, %v4916_v56  ;;  %v965_v59 = vrot.slane %v963_v43, 7  ;;  %v6463_v25 = vld [vmem:[#allocation7_spill] sm:$0xff]  ;;  %v6464_v40 = vld [vmem:[#allocation8_spill] sm:$0xff] }
  0xae   :  { %v1423_v9 = vcombine.low %v5532_v34, %v5540_v19  ;;  %v961_v5 = vrot.slane %v960_v11, 2  ;;  %v1424_v28 = vcombine.low %v5559_v6, %v4123_v24  ;;  %v881_v46 = vcombine.high %v4123_v24, %v4123_v24 }
  0xaf   :  { %v970_v45 = vrot.slane %v968_v39, 6  ;;  %v1564_v33 = vcombine.high %v5836_v58, %v1562_v54  ;;  %v1563_v26 = vcombine.low %v5836_v58, %v1562_v54  ;;  %v973_v16 = vrot.slane %v971_v38, 7 }
  0xb0   :  { %v1431_v18 = vrot.slane %v1423_v9, %v4916_v56  ;;  %v1546_v32 = vcombine.high %v5812_v3, %v5833_v63  ;;  %2704 = vmatmul.mubr.bf16.gmra.mxu0 %v1385_v62  ;;  %v966_v52 = vsel %vm4977_vm6, %v961_v5, %v965_v59  ;;  %v1438_v34 = vrot.slane %v1424_v28, %v4916_v56  ;;  %v6462_v62 = vld [vmem:[#allocation6_spill] sm:$0xff] }
  0xb1   :  { %2713 = vmatprep.mubr.bf16.mxu0 %v1404_v36  ;;  %v1566_v19 = vcombine.low %v5594_v31, %v966_v52  ;;  %v1573_v6 = vrot.slane %v1565_v35, %v4916_v56  ;;  %v982_v14 = vshrl.u32 %v4124_v1, 16  ;;  %v985_v44 = vshll.u32 %v4124_v1, 16 }
  0xb2   :  { %v1440_v29 = vcombine.high %v1431_v18, %v1438_v34  ;;  %v977_v57 = vshll.u32 %v881_v46, 16  ;;  %v1439_v10 = vcombine.low %v1431_v18, %v1438_v34  ;;  %v974_v0 = vor.u32 %v973_v16, %v970_v45 }
  0xb3   :  { %v1580_v47 = vrot.slane %v1566_v19, %v4916_v56  ;;  %v1441_v7 = vcombine.low %v6462_v62, %v5622_v2  ;;  %v1442_v8 = vcombine.low %v5628_v60, %v4124_v1  ;;  %v1403_v31 = vcombine.low %v5817_v55, %v5827_v53 }
  0xb4   :  { %2807 = vmatmul.mubr.bf16.gmra.mxu1 %v1527_v30  ;;  %v882_v24 = vcombine.high %v4124_v1, %v4124_v1  ;;  %v984_v12 = vrot.slane %v982_v14, 6  ;;  %v987_v49 = vrot.slane %v985_v44, 7  ;;  %v1545_v2 = vcombine.low %v5812_v3, %v5833_v63 }
  0xb5   :  { %2816 = vmatprep.mubr.bf16.mxu1 %v1546_v32  ;;  %v1582_v17 = vcombine.high %v1573_v6, %v1580_v47  ;;  %v1581_v61 = vcombine.low %v1573_v6, %v1580_v47  ;;  %v1449_v51 = vrot.slane %v1441_v7, %v4916_v56  ;;  %v1456_v30 = vrot.slane %v1442_v8, %v4916_v56 }
  0xb6   :  { %v988_v22 = vor.u32 %v987_v49, %v984_v12  ;;  %v991_v58 = vshll.u32 %v882_v24, 16  ;;  %v975_v21 = vrot.slane %v974_v0, 2  ;;  %v979_v60 = vrot.slane %v977_v57, 7 }
  0xb7   :  { %v1458_v4 = vcombine.high %v1449_v51, %v1456_v30  ;;  %v1457_v53 = vcombine.low %v1449_v51, %v1456_v30  ;;  %v1583_v27 = vcombine.low %v6463_v25, %v5641_v37 }
  0xb8   :  { %2714 = vmatmul.mubr.bf16.gmra.mxu0 %v1403_v31  ;;  %v989_v20 = vrot.slane %v988_v22, 2  ;;  %v993_v55 = vrot.slane %v991_v58, 7  ;;  %v980_v15 = vsel %vm4977_vm6, %v975_v21, %v979_v60 }
  0xb9   :  { %2723 = vmatprep.mubr.bf16.mxu0 %v1422_v48  ;;  %v1584_v43 = vcombine.low %v6464_v40, %v980_v15 }
  0xbc   :  { %2817 = vmatmul.mubr.bf16.gmra.mxu1 %v1545_v2 }
  0xbd   :  { %2826 = vmatprep.mubr.bf16.mxu1 %v1564_v33 }
  0xc0   :  { %2724 = vmatmul.mubr.bf16.gmra.mxu0 %v1421_v13 }
  0xc1   :  { %2733 = vmatprep.mubr.bf16.mxu0 %v1440_v29 }
  0xc2   :  { %12 = vsyncpa [#allocation3], 0  ;;  %v1591_v3 = vrot.slane %v1583_v27, %v4916_v56  ;;  %v1598_v63 = vrot.slane %v1584_v43, %v4916_v56  ;;  %v994_v35 = vsel %vm4977_vm6, %v989_v20, %v993_v55  ;;  %v1601_v48 = vcombine.low %v5681_v41, %v5702_v50  ;;  %v6465_v36 = vld [vmem:[#allocation5_spill] sm:$0xff]  ;;  %v1763_v41 = vld [vmem:[%s6438_s2] sm:$0x3]  ;;  %s4719_s15 = smov [#allocation2]  }
  0xc3   :  { %v1602_v37 = vcombine.low %v5715_v42, %v994_v35  ;;  %v1767_v54 = vsub.s32 0, %v6465_v36  ;;  %v1771_v50 = vsub.s32 1, %v6465_v36  ;;  %v4618_v19 = vld [vmem:[%s6439_s3 + $0x38] sm:$0xff]   ;;  %v4621_v24 = vld [vmem:[%s6439_s3 + $0x70] sm:$0xff]   ;;  %v4626_v43 = vld [vmem:[%s6439_s3 + $0x28] sm:$0xff]   ;;  %vm3172_vm7 = vcmask 1041409  }
  0xc4   :  { %2827 = vmatmul.mubr.bf16.gmra.mxu1 %v1563_v26  ;;  %v1600_v39 = vcombine.high %v1591_v3, %v1598_v63  ;;  %v1609_v11 = vrot.slane %v1601_v48, %v4916_v56  ;;  %v1599_v38 = vcombine.low %v1591_v3, %v1598_v63  ;;  %v4617_v26 = vld [vmem:[%s6439_s3 + $0x78] sm:$0xff]   ;;  %v4622_v2 = vld [vmem:[%s6439_s3 + $0x30] sm:$0xff]   ;;  %v4627_v3 = vld [vmem:[%s6439_s3 + $0xe8] sm:$0xff]   ;;  %vm3175_vm8 = vcmask 1042434   ;;  %s4077_s1 = sshll.u32 %s4719_s15, 4  ;;  %s4078_s1 = int_to_ptr.vmem [resolvable:$true] %s4077_s1 }
  0xc5   :  { %2836 = vmatprep.mubr.bf16.mxu1 %v1582_v17  ;;  %v1616_v13 = vrot.slane %v1602_v37, %v4916_v56  ;;  %v5901_v42 = vrot.slane %v1763_v41, %v1767_v54  ;;  %v5903_v59 = vrot.slane %v1763_v41, %v1771_v50  ;;  %4322 = vmatprep.subr.bf16.mxu0 %v4617_v26  ;;  %v4619_v6 = vld [vmem:[%s6439_s3 + $0xf8] sm:$0xff]   ;;  %v4623_v21 = vld [vmem:[%s6439_s3 + $0xf0] sm:$0xff]   ;;  %v4628_v63 = vld [vmem:[%s6439_s3 + $0xa8] sm:$0xff]   ;;  %vm3178_vm9 = vcmask 1043459   ;;  %s4694_s16 = scalar_lea.vmem %s4078_s1, 128  ;;  %p4699_p1 = scmp.lt.s32.totalorder %s4078_s1, %s4078_s1 }
  0xc6   :  { %4323 = vmatpush3.bf16.msra.mxu0 %v4618_v19  ;;  %4344 = vmatprep.subr.bf16.mxu1 %v4619_v6  ;;  %v4624_v60 = vld [vmem:[%s6439_s3 + $0xb0] sm:$0xff]   ;;  %vm3181_vm10 = vcmask 1044484   ;;  %vm3184_vm11 = vcmask 1045509   ;;  %vm3187_vm12 = vcmask 1046534   ;;  %vm3190_vm13 = vcmask 1047559   ;;  %p4695_p0 = scmp.ne.s32.totalorder %s4078_s1, %s4694_s16  ;;  %p4700_p2 = scmp.lt.s32.totalorder %s4694_s16, %s4694_s16 }
  0xc7   :  { %v1618_v1 = vcombine.high %v1609_v11, %v1616_v13  ;;  %v1617_v23 = vcombine.low %v1609_v11, %v1616_v13  ;;  %4324 = vmatprep.subr.bf16.mxu0 %v4621_v24  ;;  %vm4718_vm14 = vmmov 0   ;;  %vm4026_vm15 = vcmask 261120  }
  0xc8   :  { %2734 = vmatmul.mubr.bf16.gmra.mxu0 %v1439_v10  ;;  %v4620_v10 = vld [vmem:[%s6439_s3 + $0xb8] sm:$0xff]   ;;  %p4701_p3 = por %p4700_p2, %p4699_p1 }
  0xc9   :  { %2743 = vmatprep.mubr.bf16.mxu0 %v1458_v4  ;;  %4345 = vmatpush3.bf16.msra.mxu1 %v4620_v10  ;;  %v4636_v10 = vld [vmem:[%s6439_s3 + $0x98] sm:$0xff]  }
  0xca   :  { %4325 = vmatpush3.bf16.msra.mxu0 %v4622_v2  ;;  %4346 = vmatprep.subr.bf16.mxu1 %v4623_v21  ;;  %p4702_p4 = pnand %p4701_p3, %p4695_p0 }
  0xcc   :  { %2837 = vmatmul.mubr.bf16.gmra.mxu1 %v1581_v61 }
  0xcd   :  { %2846 = vmatprep.mubr.bf16.mxu1 %v1600_v39  ;;  %4347 = vmatpush3.bf16.msra.mxu1 %v4624_v60 }
  0xce   :  { %4348 = vmatprep.subr.bf16.mxu1 %v4627_v3 }
  0xd0   :  { %2744 = vmatmul.mubr.bf16.gmra.mxu0 %v1457_v53  ;;  %v4625_v53 = vld [vmem:[%s6439_s3 + $0x68] sm:$0xff]  }
  0xd1   :  { %4326 = vmatprep.subr.bf16.mxu0 %v4625_v53  ;;  %4349 = vmatpush3.bf16.msra.mxu1 %v4628_v63 }
  0xd2   :  { %4327 = vmatpush3.bf16.msra.mxu0 %v4626_v43 }
  0xd4   :  { %2847 = vmatmul.mubr.bf16.gmra.mxu1 %v1599_v38 }
  0xd5   :  { %2856 = vmatprep.mubr.bf16.mxu1 %v1618_v1 }
  0xdc   :  { %2857 = vmatmul.mubr.bf16.gmra.mxu1 %v1617_v23 }
 0x102   :  { %v2449_v56 = vpop.f32.mrf.mxu0 }
 0x103   :  { %v2450_v9 = vadd.f32 %v2449_v56, %v5901_v42  ;;  %v2562_v5 = vpop.f32.mrf.mxu1  ;;  %v4629_v56 = vld [vmem:[%s6439_s3 + $0x60] sm:$0xff]  }
 0x104   :  { %v2451_v28 = vpop.f32.mrf.mxu0  ;;  %4328 = vmatprep.subr.bf16.mxu0 %v4629_v56 }
 0x105   :  { %v5906_v46 = vadd.f32 %v2562_v5, %v2450_v9  ;;  %v2452_v45 = vadd.f32 %v2451_v28, %v5903_v59  ;;  %v2564_v33 = vpop.f32.mrf.mxu1  ;;  %v4630_v5 = vld [vmem:[%s6439_s3 + $0x20] sm:$0xff]  }
 0x106   :  { %v2453_v18 = vpop.f32.mrf.mxu0  ;;  %v4631_v28 = vld [vmem:[%s6439_s3 + $0xe0] sm:$0xff]   ;;  %4329 = vmatpush3.bf16.msra.mxu0 %v4630_v5 }
 0x107   :  { %v5912_v16 = vadd.f32 %v2564_v33, %v2452_v45  ;;  %v2454_v32 = vadd.f32 %v2453_v18, %v5901_v42  ;;  %v2566_v52 = vpop.f32.mrf.mxu1  ;;  %v4632_v45 = vld [vmem:[%s6439_s3 + $0xa0] sm:$0xff]   ;;  %4350 = vmatprep.subr.bf16.mxu1 %v4631_v28  ;;  %v4649_v28 = vld [vmem:[%s6439_s3 + $0x178] sm:$0xff]  }
 0x108   :  { %v2455_v34 = vpop.f32.mrf.mxu0  ;;  %4351 = vmatpush3.bf16.msra.mxu1 %v4632_v45  ;;  %v4650_v45 = vld [vmem:[%s6439_s3 + $0x1f8] sm:$0xff]  }
 0x109   :  { %v5921_v14 = vadd.f32 %v2566_v52, %v2454_v32  ;;  %v2456_v44 = vadd.f32 %v2455_v34, %v5903_v59  ;;  %v2568_v29 = vpop.f32.mrf.mxu1  ;;  %v4633_v32 = vld [vmem:[%s6439_s3 + $0x58] sm:$0xff]  }
 0x10a   :  { %v2459_v57 = vpop.f32.mrf.mxu0  ;;  %4330 = vmatprep.subr.bf16.mxu0 %v4633_v32 }
 0x10b   :  { %v5927_v47 = vadd.f32 %v2568_v29, %v2456_v44  ;;  %v2460_v7 = vadd.f32 %v2459_v57, %v5901_v42  ;;  %v4635_v44 = vld [vmem:[%s6439_s3 + $0xd8] sm:$0xff]  }
 0x10c   :  { %v2461_v0 = vpop.f32.mrf.mxu0  ;;  %v4634_v57 = vld [vmem:[%s6439_s3 + $0x18] sm:$0xff]   ;;  %4352 = vmatprep.subr.bf16.mxu1 %v4635_v44 }
 0x10d   :  { %v2462_v31 = vadd.f32 %v2461_v0, %v5903_v59  ;;  %4331 = vmatpush3.bf16.msra.mxu0 %v4634_v57  ;;  %4353 = vmatpush3.bf16.msra.mxu1 %v4636_v10 }
 0x10e   :  { %v2463_v62 = vpop.f32.mrf.mxu0  ;;  %v2572_v12 = vpop.f32.mrf.mxu1 }
 0x10f   :  { %v5934_v49 = vadd.f32 %v2572_v12, %v2460_v7  ;;  %v2464_v17 = vadd.f32 %v2463_v62, %v5901_v42 }
 0x110   :  { %v2465_v8 = vpop.f32.mrf.mxu0  ;;  %v2574_v51 = vpop.f32.mrf.mxu1 }
 0x111   :  { %v5937_v30 = vadd.f32 %v2574_v51, %v2462_v31  ;;  %v2466_v22 = vadd.f32 %v2465_v8, %v5903_v59  ;;  %v4639_v51 = vld [vmem:[%s6439_s3 + $0xd0] sm:$0xff]  }
 0x112   :  { %v2469_v61 = vpop.f32.mrf.mxu0  ;;  %v2576_v4 = vpop.f32.mrf.mxu1  ;;  %4354 = vmatprep.subr.bf16.mxu1 %v4639_v51 }
 0x113   :  { %v5949_v20 = vadd.f32 %v2576_v4, %v2464_v17  ;;  %v2470_v27 = vadd.f32 %v2469_v61, %v5901_v42  ;;  %v4637_v61 = vld [vmem:[%s6439_s3 + $0x50] sm:$0xff]   ;;  %v4641_v4 = vld [vmem:[%s6439_s3 + $0x48] sm:$0xff]  }
 0x114   :  { %v2471_v58 = vpop.f32.mrf.mxu0  ;;  %v2578_v55 = vpop.f32.mrf.mxu1  ;;  %4332 = vmatprep.subr.bf16.mxu0 %v4637_v61 }
 0x115   :  { %v5954_v15 = vadd.f32 %v2578_v55, %v2466_v22  ;;  %v2472_v35 = vadd.f32 %v2471_v58, %v5903_v59  ;;  %v4638_v22 = vld [vmem:[%s6439_s3 + $0x10] sm:$0xff]   ;;  %v4643_v55 = vld [vmem:[%s6439_s3 + $0xc8] sm:$0xff]  }
 0x116   :  { %v2473_v25 = vpop.f32.mrf.mxu0  ;;  %v4640_v58 = vld [vmem:[%s6439_s3 + $0x90] sm:$0xff]   ;;  %4333 = vmatpush3.bf16.msra.mxu0 %v4638_v22 }
 0x117   :  { %v2474_v37 = vadd.f32 %v2473_v25, %v5901_v42  ;;  %4355 = vmatpush3.bf16.msra.mxu1 %v4640_v58  ;;  %v4642_v25 = vld [vmem:[%s6439_s3 + $0x8] sm:$0xff]   ;;  %4334 = vmatprep.subr.bf16.mxu0 %v4641_v4 }
 0x118   :  { %v2475_v40 = vpop.f32.mrf.mxu0  ;;  %4356 = vmatprep.subr.bf16.mxu1 %v4643_v55 }
 0x119   :  { %v2476_v1 = vadd.f32 %v2475_v40, %v5903_v59 }
 0x11a   :  { %4335 = vmatpush3.bf16.msra.mxu0 %v4642_v25 }
 0x11b   :  { %v2582_v39 = vpop.f32.mrf.mxu1 }
 0x11c   :  { %v5967_v48 = vadd.f32 %v2582_v39, %v2470_v27  ;;  %v4644_v27 = vld [vmem:[%s6439_s3 + $0x88] sm:$0xff]  }
 0x11d   :  { %v2479_v11 = vpop.f32.mrf.mxu0  ;;  %v2584_v13 = vpop.f32.mrf.mxu1  ;;  %4357 = vmatpush3.bf16.msra.mxu1 %v4644_v27 }
 0x11e   :  { %v5970_v38 = vadd.f32 %v2584_v13, %v2472_v35  ;;  %v2480_v33 = vadd.f32 %v2479_v11, %v5901_v42  ;;  %v4645_v11 = vld [vmem:[%s6439_s3 + $0x40] sm:$0xff]  }
 0x11f   :  { %v2481_v23 = vpop.f32.mrf.mxu0  ;;  %v2586_v36 = vpop.f32.mrf.mxu1  ;;  %v4647_v13 = vld [vmem:[%s6439_s3 + $0xc0] sm:$0xff]   ;;  %4336 = vmatprep.subr.bf16.mxu0 %v4645_v11 }
 0x120   :  { %v5973_v54 = vadd.f32 %v2586_v36, %v2474_v37  ;;  %v2482_v18 = vadd.f32 %v2481_v23, %v5903_v59  ;;  %v4646_v23 = vld [vmem:[%s6439_s3] sm:$0xff]   ;;  %4358 = vmatprep.subr.bf16.mxu1 %v4647_v13 }
 0x121   :  { %v2483_v41 = vpop.f32.mrf.mxu0  ;;  %v2588_v50 = vpop.f32.mrf.mxu1  ;;  %v4648_v36 = vld [vmem:[%s6439_s3 + $0x80] sm:$0xff]   ;;  %4337 = vmatpush3.bf16.msra.mxu0 %v4646_v23 }
 0x122   :  { %v5978_v9 = vadd.f32 %v2588_v50, %v2476_v1  ;;  %v2484_v19 = vadd.f32 %v2483_v41, %v5901_v42  ;;  %4359 = vmatpush3.bf16.msra.mxu1 %v4648_v36  ;;  %4366 = vmatprep.subr.bf16.mxu0 %v4649_v28 }
 0x123   :  { %v2485_v26 = vpop.f32.mrf.mxu0  ;;  %4388 = vmatprep.subr.bf16.mxu1 %v4650_v45 }
 0x124   :  { %v2486_v62 = vadd.f32 %v2485_v26, %v5903_v59 }
 0x126   :  { %v2592_v52 = vpop.f32.mrf.mxu1 }
 0x127   :  { %v5994_v34 = vadd.f32 %v2592_v52, %v2480_v33 }
 0x128   :  { %v2594_v29 = vpop.f32.mrf.mxu1 }
 0x129   :  { %v6006_v0 = vadd.f32 %v2594_v29, %v2482_v18 }
 0x12a   :  { %v2489_v6 = vpop.f32.mrf.mxu0  ;;  %v2596_v8 = vpop.f32.mrf.mxu1 }
 0x12b   :  { %v6009_v31 = vadd.f32 %v2596_v8, %v2484_v19  ;;  %v2490_v2 = vadd.f32 %v2489_v6, %v5901_v42 }
 0x12c   :  { %v2491_v7 = vpop.f32.mrf.mxu0  ;;  %v2598_v24 = vpop.f32.mrf.mxu1 }
 0x12d   :  { %v6011_v12 = vadd.f32 %v2598_v24, %v2486_v62  ;;  %v2492_v60 = vadd.f32 %v2491_v7, %v5903_v59 }
 0x12e   :  { %v2493_v17 = vpop.f32.mrf.mxu0 }
 0x12f   :  { %v2494_v43 = vadd.f32 %v2493_v17, %v5901_v42 }
 0x130   :  { %v2495_v21 = vpop.f32.mrf.mxu0 }
 0x131   :  { %v2496_v39 = vadd.f32 %v2495_v21, %v5903_v59 }
 0x136   :  { %v2602_v53 = vpop.f32.mrf.mxu1  ;;  %v2499_v3 = vpop.f32.mrf.mxu0 }
 0x137   :  { %v6039_v40 = vadd.f32 %v2602_v53, %v2490_v2  ;;  %v2500_v33 = vadd.f32 %v2499_v3, %v5901_v42 }
 0x138   :  { %v2604_v63 = vpop.f32.mrf.mxu1  ;;  %v2501_v37 = vpop.f32.mrf.mxu0 }
 0x139   :  { %v6042_v35 = vadd.f32 %v2604_v63, %v2492_v60  ;;  %v2502_v18 = vadd.f32 %v2501_v37, %v5903_v59 }
 0x13a   :  { %v2606_v1 = vpop.f32.mrf.mxu1  ;;  %v2503_v50 = vpop.f32.mrf.mxu0 }
 0x13b   :  { %v6057_v41 = vadd.f32 %v2606_v1, %v2494_v43  ;;  %v2504_v19 = vadd.f32 %v2503_v50, %v5901_v42 }
 0x13c   :  { %v2608_v56 = vpop.f32.mrf.mxu1  ;;  %v2505_v26 = vpop.f32.mrf.mxu0 }
 0x13d   :  { %v6059_v5 = vadd.f32 %v2608_v56, %v2496_v39  ;;  %v2506_v57 = vadd.f32 %v2505_v26, %v5903_v59 }
 0x142   :  { %v2612_v32 = vpop.f32.mrf.mxu1 }
 0x143   :  { %v6069_v52 = vadd.f32 %v2612_v32, %v2500_v33  ;;  %v2509_v6 = vpop.f32.mrf.mxu0 }
 0x144   :  { %v2614_v44 = vpop.f32.mrf.mxu1  ;;  %v2510_v61 = vadd.f32 %v2509_v6, %v5901_v42 }
 0x145   :  { %v6072_v29 = vadd.f32 %v2614_v44, %v2502_v18  ;;  %v2511_v10 = vpop.f32.mrf.mxu0 }
 0x146   :  { %v2616_v62 = vpop.f32.mrf.mxu1  ;;  %v2512_v22 = vadd.f32 %v2511_v10, %v5903_v59 }
 0x147   :  { %v6075_v7 = vadd.f32 %v2616_v62, %v2504_v19  ;;  %v2513_v17 = vpop.f32.mrf.mxu0 }
 0x148   :  { %v2618_v8 = vpop.f32.mrf.mxu1  ;;  %v2514_v21 = vadd.f32 %v2513_v17, %v5901_v42 }
 0x149   :  { %v6077_v24 = vadd.f32 %v2618_v8, %v2506_v57  ;;  %v2515_v51 = vpop.f32.mrf.mxu0 }
 0x14a   :  { %v2516_v53 = vadd.f32 %v2515_v51, %v5903_v59 }
 0x150   :  { %v2622_v58 = vpop.f32.mrf.mxu1  ;;  %v2519_v60 = vpop.f32.mrf.mxu0 }
 0x151   :  { %v6081_v2 = vadd.f32 %v2622_v58, %v2510_v61  ;;  %v2520_v11 = vadd.f32 %v2519_v60, %v5901_v42 }
 0x152   :  { %v2624_v4 = vpop.f32.mrf.mxu1  ;;  %v2521_v25 = vpop.f32.mrf.mxu0 }
 0x153   :  { %v6084_v55 = vadd.f32 %v2624_v4, %v2512_v22  ;;  %v2522_v58 = vadd.f32 %v2521_v25, %v5903_v59 }
 0x154   :  { %v2626_v27 = vpop.f32.mrf.mxu1  ;;  %v2523_v3 = vpop.f32.mrf.mxu0 }
 0x155   :  { %v6087_v43 = vadd.f32 %v2626_v27, %v2514_v21  ;;  %v2524_v50 = vadd.f32 %v2523_v3, %v5901_v42 }
 0x156   :  { %v2628_v63 = vpop.f32.mrf.mxu1  ;;  %v2525_v37 = vpop.f32.mrf.mxu0 }
 0x157   :  { %v6089_v39 = vadd.f32 %v2628_v63, %v2516_v53 }
 0x158   :  { %v2675_v13 = vpop.f32.mrf.mxu0 }
 0x159   :  { %v2676_v32 = vadd.f32 %v2675_v13, %v5906_v46 }
 0x15a   :  { %v2677_v1 = vpop.f32.mrf.mxu0 }
 0x15b   :  { %v2678_v44 = vadd.f32 %v2677_v1, %v5912_v16 }
 0x15c   :  { %v2632_v23 = vpop.f32.mrf.mxu1  ;;  %v2679_v56 = vpop.f32.mrf.mxu0 }
 0x15d   :  { %v6092_v36 = vadd.f32 %v2632_v23, %v2520_v11  ;;  %v2680_v45 = vadd.f32 %v2679_v56, %v5921_v14 }
 0x15e   :  { %v2634_v28 = vpop.f32.mrf.mxu1  ;;  %v2681_v33 = vpop.f32.mrf.mxu0 }
 0x15f   :  { %v2682_v51 = vadd.f32 %v2681_v33, %v5927_v47  ;;  %v6106_v1 = vadd.f32 %v2634_v28, %v2522_v58  ;;  %v6109_v47 = vadd.f32 %v2525_v37, %v5903_v59 }
 0x160   :  { %v2636_v26 = vpop.f32.mrf.mxu1  ;;  %v2685_v19 = vpop.f32.mrf.mxu0 }
 0x161   :  { %v6096_v18 = vadd.f32 %v2636_v26, %v2524_v50  ;;  %v2686_v27 = vadd.f32 %v2685_v19, %v5934_v49 }
 0x162   :  { %v6099_v6 = vpop.f32.mrf.mxu1  ;;  %v2687_v57 = vpop.f32.mrf.mxu0 }
 0x163   :  { %v2688_v25 = vadd.f32 %v2687_v57, %v5937_v30 }
 0x164   :  { %v2788_v10 = vpop.f32.mrf.mxu1  ;;  %v2689_v8 = vpop.f32.mrf.mxu0 }
 0x165   :  { %v2789_v62 = vadd.f32 %v2788_v10, %v2676_v32  ;;  %v2690_v17 = vadd.f32 %v2689_v8, %v5949_v20 }
 0x166   :  { %v2790_v42 = vpop.f32.mrf.mxu1  ;;  %v2691_v22 = vpop.f32.mrf.mxu0 }
 0x167   :  { %v2867_v61 = vmax.f32 %v2789_v62, 0.0  ;;  %v2791_v14 = vadd.f32 %v2790_v42, %v2678_v44  ;;  %v2692_v19 = vadd.f32 %v2691_v22, %v5954_v15 }
 0x168   :  { %v2792_v46 = vpop.f32.mrf.mxu1  ;;  %v2695_v53 = vpop.f32.mrf.mxu0 }
 0x169   :  { %v2915_v21 = vrot.slane %v2867_v61, 1  ;;  %v2868_v60 = vmax.f32 %v2791_v14, 0.0  ;;  %v2793_v4 = vadd.f32 %v2792_v46, %v2680_v45  ;;  %v2696_v44 = vadd.f32 %v2695_v53, %v5967_v48 }
 0x16a   :  { %v2794_v16 = vpop.f32.mrf.mxu1  ;;  %v2697_v20 = vpop.f32.mrf.mxu0 }
 0x16b   :  { %v2947_v3 = vmax.f32 %v2867_v61, %v2915_v21  ;;  %v2916_v63 = vrot.slane %v2868_v60, 1  ;;  %v2869_v11 = vmax.f32 %v2793_v4, 0.0  ;;  %v2795_v13 = vadd.f32 %v2794_v16, %v2682_v51 }
 0x16c   :  { %v2798_v23 = vpop.f32.mrf.mxu1  ;;  %v2699_v26 = vpop.f32.mrf.mxu0  ;;  %v2698_v61 = vadd.f32 %v2697_v20, %v5970_v38 }
 0x16d   :  { %v2979_v50 = vrot.slane %v2947_v3, 4  ;;  %v2948_v56 = vmax.f32 %v2868_v60, %v2916_v63  ;;  %v3043_v45 = vrot.slane %v2869_v11, 1  ;;  %v2870_v33 = vmax.f32 %v2795_v13, 0.0 }
 0x16e   :  { %v2799_v32 = vadd.f32 %v2798_v23, %v2686_v27  ;;  %v2800_v49 = vpop.f32.mrf.mxu1  ;;  %v2700_v28 = vadd.f32 %v2699_v26, %v5973_v54  ;;  %v2701_v8 = vpop.f32.mrf.mxu0 }
 0x16f   :  { %v6115_v10 = vmax.f32 %v2947_v3, %v2979_v50  ;;  %v2980_v59 = vrot.slane %v2948_v56, 4  ;;  %v3075_v37 = vmax.f32 %v2869_v11, %v3043_v45  ;;  %v3044_v62 = vrot.slane %v2870_v33, 1 }
 0x170   :  { %v2871_v30 = vmax.f32 %v2799_v32, 0.0  ;;  %v2801_v57 = vadd.f32 %v2800_v49, %v2688_v25  ;;  %v2802_v42 = vpop.f32.mrf.mxu1  ;;  %v6119_v14 = vadd.f32 %v2701_v8, %v5978_v9  ;;  %v2705_v22 = vpop.f32.mrf.mxu0 }
 0x171   :  { %v3208_v15 = vrot.slane %v6115_v10, 2  ;;  %v6122_v51 = vmax.f32 %v2948_v56, %v2980_v59  ;;  %v3107_v48 = vrot.slane %v3075_v37, 4  ;;  %v3076_v54 = vmax.f32 %v2870_v33, %v3044_v62 }
 0x172   :  { %v2917_v58 = vrot.slane %v2871_v30, 1  ;;  %v2872_v46 = vmax.f32 %v2801_v57, 0.0  ;;  %v2803_v21 = vadd.f32 %v2802_v42, %v2690_v17  ;;  %v2804_v60 = vpop.f32.mrf.mxu1  ;;  %v6125_v4 = vadd.f32 %v2705_v22, %v5994_v34  ;;  %v2707_v27 = vpop.f32.mrf.mxu0 }
 0x173   :  { %v3222_v38 = vrot.slane %v6122_v51, 2  ;;  %v6128_v53 = vmax.f32 %v3075_v37, %v3107_v48  ;;  %v3108_v9 = vrot.slane %v3076_v54, 4  ;;  %v2805_v16 = vadd.f32 %v2804_v60, %v2692_v19 }
 0x174   :  { %v2949_v3 = vmax.f32 %v2871_v30, %v2917_v58  ;;  %v2918_v63 = vrot.slane %v2872_v46, 1  ;;  %v2873_v11 = vmax.f32 %v2803_v21, 0.0  ;;  %v2808_v13 = vpop.f32.mrf.mxu1  ;;  %v6131_v20 = vadd.f32 %v2707_v27, %v6006_v0  ;;  %v2709_v50 = vpop.f32.mrf.mxu0 }
 0x175   :  { %v3284_v17 = vrot.slane %v6128_v53, 2  ;;  %v6134_v23 = vmax.f32 %v3076_v54, %v3108_v9  ;;  %v2874_v34 = vmax.f32 %v2805_v16, 0.0  ;;  %v2809_v25 = vadd.f32 %v2808_v13, %v2696_v44 }
 0x176   :  { %v2981_v56 = vrot.slane %v2949_v3, 4  ;;  %v2950_v45 = vmax.f32 %v2872_v46, %v2918_v63  ;;  %v3045_v33 = vrot.slane %v2873_v11, 1  ;;  %v2810_v26 = vpop.f32.mrf.mxu1  ;;  %v6137_v32 = vadd.f32 %v2709_v50, %v6009_v31  ;;  %v2711_v37 = vpop.f32.mrf.mxu0 }
 0x177   :  { %v3298_v49 = vrot.slane %v6134_v23, 2  ;;  %v3046_v19 = vrot.slane %v2874_v34, 1  ;;  %v2875_v59 = vmax.f32 %v2809_v25, 0.0  ;;  %v2811_v0 = vadd.f32 %v2810_v26, %v2698_v61 }
 0x178   :  { %v3013_v62 = vmax.f32 %v2949_v3, %v2981_v56  ;;  %v2982_v8 = vrot.slane %v2950_v45, 4  ;;  %v3077_v30 = vmax.f32 %v2873_v11, %v3045_v33  ;;  %v2812_v57 = vpop.f32.mrf.mxu1  ;;  %v6141_v44 = vadd.f32 %v2711_v37, %v6011_v12  ;;  %v6143_v31 = vpop.f32.mrf.mxu0 }
 0x179   :  { %v3078_v42 = vmax.f32 %v2874_v34, %v3046_v19  ;;  %v2919_v48 = vrot.slane %v2875_v59, 1  ;;  %v2876_v54 = vmax.f32 %v2811_v0, 0.0  ;;  %v2813_v22 = vadd.f32 %v2812_v57, %v2700_v28 }
 0x17a   :  { %v3171_v58 = vrot.slane %v3013_v62, 7  ;;  %v3209_v46 = vrot.slane %v3013_v62, 1  ;;  %v3014_v21 = vmax.f32 %v2950_v45, %v2982_v8  ;;  %v3109_v60 = vrot.slane %v3077_v30, 4  ;;  %v2814_v9 = vpop.f32.mrf.mxu1  ;;  %v6145_v63 = vpop.f32.mrf.mxu0 }
 0x17b   :  { %v3110_v61 = vrot.slane %v3078_v42, 4  ;;  %v2951_v16 = vmax.f32 %v2875_v59, %v2919_v48  ;;  %v2920_v27 = vrot.slane %v2876_v54, 1  ;;  %v2877_v3 = vmax.f32 %v2813_v22, 0.0 }
 0x17c   :  { %v3173_v12 = vsel %vm3172_vm7, %v3171_v58, %v6115_v10  ;;  %v3210_v11 = vsel %vm3172_vm7, %v3209_v46, %v3208_v15  ;;  %v3192_v13 = vrot.slane %v3014_v21, 7  ;;  %v3223_v28 = vrot.slane %v3014_v21, 1  ;;  %v2818_v34 = vpop.f32.mrf.mxu1  ;;  %v6150_v33 = vpop.f32.mrf.mxu0 }
 0x17d   :  { %v3141_v25 = vmax.f32 %v3077_v30, %v3109_v60  ;;  %v3142_v50 = vmax.f32 %v3078_v42, %v3110_v61  ;;  %v2983_v56 = vrot.slane %v2951_v16, 4  ;;  %v2952_v45 = vmax.f32 %v2876_v54, %v2920_v27 }
 0x17e   :  { %v3193_v26 = vsel %vm3172_vm7, %v3192_v13, %v6122_v51  ;;  %v3224_v19 = vsel %vm3172_vm7, %v3223_v28, %v3222_v38  ;;  %v3047_v59 = vrot.slane %v2877_v3, 1  ;;  %v2815_v0 = vadd.f32 %v2814_v9, %v6119_v14  ;;  %v2820_v10 = vpop.f32.mrf.mxu1  ;;  %v6156_v57 = vpop.f32.mrf.mxu0 }
 0x17f   :  { %v3254_v37 = vrot.slane %v3141_v25, 7  ;;  %v3285_v15 = vrot.slane %v3141_v25, 1  ;;  %v3268_v62 = vrot.slane %v3142_v50, 7  ;;  %v3299_v8 = vrot.slane %v3142_v50, 1 }
 0x180   :  { %v3015_v30 = vmax.f32 %v2951_v16, %v2983_v56  ;;  %v2984_v42 = vrot.slane %v2952_v45, 4  ;;  %v3079_v48 = vmax.f32 %v2877_v3, %v3047_v59  ;;  %v2878_v54 = vmax.f32 %v2815_v0, 0.0  ;;  %v2822_v22 = vpop.f32.mrf.mxu1  ;;  %v6166_v46 = vpop.f32.mrf.mxu0 }
 0x181   :  { %v3255_v51 = vsel %vm3172_vm7, %v3254_v37, %v6128_v53  ;;  %v3286_v38 = vsel %vm3172_vm7, %v3285_v15, %v3284_v17  ;;  %v3269_v14 = vsel %vm3172_vm7, %v3268_v62, %v6134_v23  ;;  %v3300_v58 = vsel %vm3172_vm7, %v3299_v8, %v3298_v49 }
 0x182   :  { %v3174_v21 = vrot.slane %v3015_v30, 6  ;;  %v6169_v60 = vsel %vm3175_vm8, %v3015_v30, %v3210_v11  ;;  %v3016_v9 = vmax.f32 %v2952_v45, %v2984_v42  ;;  %v3111_v61 = vrot.slane %v3079_v48, 4  ;;  %v2824_v16 = vpop.f32.mrf.mxu1  ;;  %v6174_v13 = vpop.f32.mrf.mxu0 }
 0x183   :  { %v3048_v27 = vrot.slane %v2878_v54, 1  ;;  %v2819_v3 = vadd.f32 %v2818_v34, %v6125_v4  ;;  %v2821_v53 = vadd.f32 %v2820_v10, %v6131_v20  ;;  %v2823_v17 = vadd.f32 %v2822_v22, %v6137_v32 }
 0x184   :  { %v6177_v23 = vsel %vm3175_vm8, %v3174_v21, %v3173_v12  ;;  %v3194_v49 = vrot.slane %v3016_v9, 6  ;;  %v6180_v28 = vsel %vm3175_vm8, %v3016_v9, %v3224_v19  ;;  %v3143_v11 = vmax.f32 %v3079_v48, %v3111_v61  ;;  %v2828_v25 = vpop.f32.mrf.mxu1  ;;  %v6182_v4 = vpop.f32.mrf.mxu0 }
 0x185   :  { %v3080_v50 = vmax.f32 %v2878_v54, %v3048_v27  ;;  %v2879_v56 = vmax.f32 %v2819_v3, 0.0  ;;  %v2880_v45 = vmax.f32 %v2821_v53, 0.0  ;;  %v2881_v59 = vmax.f32 %v2823_v17, 0.0 }
 0x186   :  { %v3195_v20 = vsel %vm3175_vm8, %v3194_v49, %v3193_v26  ;;  %v3256_v32 = vrot.slane %v3143_v11, 6  ;;  %v3287_v34 = vsel %vm3175_vm8, %v3143_v11, %v3286_v38  ;;  %v2825_v12 = vadd.f32 %v2824_v16, %v6141_v44  ;;  %v2830_v0 = vpop.f32.mrf.mxu1  ;;  %v6187_v62 = vpop.f32.mrf.mxu0 }
 0x187   :  { %v3112_v10 = vrot.slane %v3080_v50, 4  ;;  %v2921_v19 = vrot.slane %v2879_v56, 1  ;;  %v2922_v37 = vrot.slane %v2880_v45, 1  ;;  %v3049_v15 = vrot.slane %v2881_v59, 1 }
 0x188   :  { %v3257_v8 = vsel %vm3175_vm8, %v3256_v32, %v3255_v51  ;;  %v2882_v30 = vmax.f32 %v2825_v12, 0.0  ;;  %v2716_v42 = vadd.f32 %v6143_v31, %v6039_v40  ;;  %v2718_v26 = vadd.f32 %v6145_v63, %v6042_v35  ;;  %v2832_v48 = vpop.f32.mrf.mxu1  ;;  %v6196_v51 = vpop.f32.mrf.mxu0 }
 0x189   :  { %v3144_v54 = vmax.f32 %v3080_v50, %v3112_v10  ;;  %v2953_v22 = vmax.f32 %v2879_v56, %v2921_v19  ;;  %v2954_v44 = vmax.f32 %v2880_v45, %v2922_v37  ;;  %v3081_v38 = vmax.f32 %v2881_v59, %v3049_v15 }
 0x18a   :  { %v3050_v21 = vrot.slane %v2882_v30, 1  ;;  %v2829_v9 = vadd.f32 %v2828_v25, %v2716_v42  ;;  %v2831_v61 = vadd.f32 %v2830_v0, %v2718_v26  ;;  %v2720_v16 = vadd.f32 %v6150_v33, %v6057_v41  ;;  %v2834_v27 = vpop.f32.mrf.mxu1  ;;  %v2737_v0 = vpop.f32.mrf.mxu0 }
 0x18b   :  { %v3270_v3 = vrot.slane %v3144_v54, 6  ;;  %v3301_v40 = vsel %vm3175_vm8, %v3144_v54, %v3300_v58  ;;  %v2985_v31 = vrot.slane %v2953_v22, 4  ;;  %v2986_v53 = vrot.slane %v2954_v44, 4 }
 0x18c   :  { %v3113_v35 = vrot.slane %v3081_v38, 4  ;;  %v3082_v63 = vmax.f32 %v2882_v30, %v3050_v21  ;;  %v2883_v17 = vmax.f32 %v2829_v9, 0.0  ;;  %v2884_v49 = vmax.f32 %v2831_v61, 0.0  ;;  %v2838_v11 = vpop.f32.mrf.mxu1 }
 0x18d   :  { %v3271_v50 = vsel %vm3175_vm8, %v3270_v3, %v3269_v14  ;;  %v3017_v25 = vmax.f32 %v2953_v22, %v2985_v31  ;;  %v3018_v56 = vmax.f32 %v2954_v44, %v2986_v53  ;;  %v2833_v45 = vadd.f32 %v2832_v48, %v2720_v16 }
 0x18e   :  { %v3145_v59 = vmax.f32 %v3081_v38, %v3113_v35  ;;  %v3114_v41 = vrot.slane %v3082_v63, 4  ;;  %v2923_v33 = vrot.slane %v2883_v17, 1  ;;  %v2924_v32 = vrot.slane %v2884_v49, 1  ;;  %v2840_v12 = vpop.f32.mrf.mxu1 }
 0x18f   :  { %v3177_v58 = vrot.slane %v3017_v25, 5  ;;  %v3212_v10 = vrot.slane %v3017_v25, 7  ;;  %v3196_v19 = vrot.slane %v3018_v56, 5  ;;  %v3226_v37 = vrot.slane %v3018_v56, 7 }
 0x190   :  { %v3258_v15 = vrot.slane %v3145_v59, 5  ;;  %v3288_v30 = vrot.slane %v3145_v59, 7  ;;  %v3146_v42 = vmax.f32 %v3082_v63, %v3114_v41  ;;  %v2955_v26 = vmax.f32 %v2883_v17, %v2923_v33  ;;  %v2842_v54 = vpop.f32.mrf.mxu1 }
 0x191   :  { %v3179_v14 = vsel %vm3178_vm9, %v3177_v58, %v6177_v23  ;;  %v3213_v48 = vsel %vm3178_vm9, %v3212_v10, %v6169_v60  ;;  %v6205_v22 = vsel %vm3178_vm9, %v3196_v19, %v3195_v20  ;;  %v6209_v44 = vsel %vm3178_vm9, %v3226_v37, %v6180_v28  ;;  %v6217_v23 = vpop.f32.mrf.mxu0 }
 0x192   :  { %v6212_v38 = vsel %vm3178_vm9, %v3258_v15, %v3257_v8  ;;  %v6215_v21 = vsel %vm3178_vm9, %v3288_v30, %v3287_v34  ;;  %v3272_v9 = vrot.slane %v3146_v42, 5  ;;  %v3302_v61 = vrot.slane %v3146_v42, 7  ;;  %v2844_v16 = vpop.f32.mrf.mxu1 }
 0x193   :  { %v2987_v3 = vrot.slane %v2955_v26, 4  ;;  %v2956_v60 = vmax.f32 %v2884_v49, %v2924_v32  ;;  %v2885_v31 = vmax.f32 %v2833_v45, 0.0  ;;  %v2722_v20 = vadd.f32 %v6156_v57, %v6059_v5 }
 0x194   :  { %v6222_v28 = vsel %vm3178_vm9, %v3272_v9, %v3271_v50  ;;  %v6225_v8 = vsel %vm3178_vm9, %v3302_v61, %v3301_v40  ;;  %v2726_v34 = vadd.f32 %v6166_v46, %v6069_v52  ;;  %v2728_v53 = vadd.f32 %v6174_v13, %v6072_v29  ;;  %v2848_v35 = vpop.f32.mrf.mxu1  ;;  %v6235_v50 = vpop.f32.mrf.mxu0 }
 0x195   :  { %v3019_v63 = vmax.f32 %v2955_v26, %v2987_v3  ;;  %v2988_v17 = vrot.slane %v2956_v60, 4  ;;  %v3051_v49 = vrot.slane %v2885_v31, 1  ;;  %v2835_v25 = vadd.f32 %v2834_v27, %v2722_v20 }
 0x196   :  { %v2839_v56 = vadd.f32 %v2838_v11, %v2726_v34  ;;  %v2841_v45 = vadd.f32 %v2840_v12, %v2728_v53  ;;  %v2730_v5 = vadd.f32 %v6182_v4, %v6075_v7  ;;  %v2732_v57 = vadd.f32 %v6187_v62, %v6077_v24  ;;  %v2850_v40 = vpop.f32.mrf.mxu1  ;;  %v2745_v19 = vpop.f32.mrf.mxu0 }
 0x197   :  { %v3180_v52 = vrot.slane %v3019_v63, 4  ;;  %v3214_v46 = vrot.slane %v3019_v63, 6  ;;  %v6237_v59 = vmax.f32 %v2956_v60, %v2988_v17  ;;  %v3083_v29 = vmax.f32 %v2885_v31, %v3051_v49 }
 0x198   :  { %v2886_v13 = vmax.f32 %v2835_v25, 0.0  ;;  %v2887_v41 = vmax.f32 %v2839_v56, 0.0  ;;  %v2888_v33 = vmax.f32 %v2841_v45, 0.0  ;;  %v2843_v27 = vadd.f32 %v2842_v54, %v2730_v5  ;;  %v6246_v62 = vpop.f32.mrf.mxu1  ;;  %v2747_v53 = vpop.f32.mrf.mxu0 }
 0x199   :  { %v6241_v11 = vadd.f32 %v6099_v6, %v6109_v47  ;;  %v3182_v7 = vsel %vm3181_vm10, %v3180_v52, %v3179_v14  ;;  %v3215_v24 = vsel %vm3181_vm10, %v3214_v46, %v3213_v48  ;;  %v3198_v4 = vrot.slane %v6237_v59, 4 }
 0x19a   :  { %v3115_v32 = vrot.slane %v3083_v29, 4  ;;  %v3052_v12 = vrot.slane %v2886_v13, 1  ;;  %v2925_v58 = vrot.slane %v2887_v41, 1  ;;  %v2926_v10 = vrot.slane %v2888_v33, 1  ;;  %v2854_v3 = vpop.f32.mrf.mxu1 }
 0x19b   :  { %v2889_v37 = vmax.f32 %v2843_v27, 0.0  ;;  %v2845_v15 = vadd.f32 %v2844_v16, %v2732_v57  ;;  %v2736_v6 = vadd.f32 %v6196_v51, %v6081_v2  ;;  %v2738_v47 = vadd.f32 %v2737_v0, %v6084_v55 }
 0x19c   :  { %v3147_v30 = vmax.f32 %v3083_v29, %v3115_v32  ;;  %v3084_v42 = vmax.f32 %v2886_v13, %v3052_v12  ;;  %v2957_v26 = vmax.f32 %v2887_v41, %v2925_v58  ;;  %v2958_v54 = vmax.f32 %v2888_v33, %v2926_v10  ;;  %v2858_v5 = vpop.f32.mrf.mxu1 }
 0x19d   :  { %v3053_v14 = vrot.slane %v2889_v37, 1  ;;  %v2890_v48 = vmax.f32 %v2845_v15, 0.0  ;;  %v2849_v9 = vadd.f32 %v2848_v35, %v2736_v6  ;;  %v2851_v61 = vadd.f32 %v2850_v40, %v2738_v47 }
 0x19e   :  { %v3260_v60 = vrot.slane %v3147_v30, 4  ;;  %v3290_v31 = vrot.slane %v3147_v30, 6  ;;  %v3116_v20 = vrot.slane %v3084_v42, 4  ;;  %v2989_v34 = vrot.slane %v2957_v26, 4  ;;  %v2860_v6 = vpop.f32.mrf.mxu1 }
 0x19f   :  { %v2990_v16 = vrot.slane %v2958_v54, 4  ;;  %v3085_v63 = vmax.f32 %v2889_v37, %v3053_v14  ;;  %v3054_v17 = vrot.slane %v2890_v48, 1  ;;  %v2891_v2 = vmax.f32 %v2849_v9, 0.0 }
 0x1a0   :  { %v3261_v55 = vsel %vm3181_vm10, %v3260_v60, %v6212_v38  ;;  %v3291_v51 = vsel %vm3181_vm10, %v3290_v31, %v6215_v21  ;;  %v6255_v0 = vmax.f32 %v3084_v42, %v3116_v20  ;;  %v3021_v35 = vmax.f32 %v2957_v26, %v2989_v34  ;;  %v2749_v38 = vpop.f32.mrf.mxu0 }
 0x1a1   :  { %v6257_v49 = vmax.f32 %v2958_v54, %v2990_v16  ;;  %v3117_v25 = vrot.slane %v3085_v63, 4  ;;  %v3086_v56 = vmax.f32 %v2890_v48, %v3054_v17  ;;  %v2927_v45 = vrot.slane %v2891_v2, 1 }
 0x1a2   :  { %v3228_v57 = vrot.slane %v6237_v59, 6  ;;  %v3274_v40 = vrot.slane %v6255_v0, 4  ;;  %v3183_v52 = vrot.slane %v3021_v35, 3  ;;  %v3216_v46 = vrot.slane %v3021_v35, 5 }
 0x1a3   :  { %v3304_v29 = vrot.slane %v6255_v0, 6  ;;  %v3200_v21 = vrot.slane %v6257_v49, 3  ;;  %v3149_v13 = vmax.f32 %v3085_v63, %v3117_v25  ;;  %v3118_v41 = vrot.slane %v3086_v56, 4 }
 0x1a4   :  { %v3185_v33 = vsel %vm3184_vm11, %v3183_v52, %v3182_v7  ;;  %v3217_v27 = vsel %vm3184_vm11, %v3216_v46, %v3215_v24  ;;  %v2959_v32 = vmax.f32 %v2891_v2, %v2927_v45  ;;  %v2892_v12 = vmax.f32 %v2851_v61, 0.0  ;;  %v2751_v7 = vpop.f32.mrf.mxu0 }
 0x1a5   :  { %v3262_v58 = vrot.slane %v3149_v13, 3  ;;  %v3292_v10 = vrot.slane %v3149_v13, 5  ;;  %v6265_v37 = vmax.f32 %v3086_v56, %v3118_v41  ;;  %v2740_v15 = vadd.f32 %v6217_v23, %v6087_v43 }
 0x1a6   :  { %v2991_v47 = vrot.slane %v2959_v32, 4  ;;  %v2928_v30 = vrot.slane %v2892_v12, 1  ;;  %v2742_v42 = vadd.f32 %v6235_v50, %v6089_v39  ;;  %v2746_v26 = vadd.f32 %v2745_v19, %v6092_v36  ;;  %v2862_v50 = vpop.f32.mrf.mxu1 }
 0x1a7   :  { %v3230_v24 = vrot.slane %v6257_v49, 5  ;;  %v6274_v54 = vsel %vm3184_vm11, %v3262_v58, %v3261_v55  ;;  %v6277_v14 = vsel %vm3184_vm11, %v3292_v10, %v3291_v51  ;;  %v3276_v48 = vrot.slane %v6265_v37, 3 }
 0x1a8   :  { %v3023_v43 = vmax.f32 %v2959_v32, %v2991_v47  ;;  %v2960_v23 = vmax.f32 %v2892_v12, %v2928_v30  ;;  %v2853_v9 = vadd.f32 %v6246_v62, %v2740_v15  ;;  %v2855_v61 = vadd.f32 %v2854_v3, %v2742_v42 }
 0x1a9   :  { %v2859_v60 = vadd.f32 %v2858_v5, %v2746_v26  ;;  %v2748_v39 = vadd.f32 %v2747_v53, %v6106_v1  ;;  %v2750_v36 = vadd.f32 %v2749_v38, %v6096_v18  ;;  %v2752_v19 = vadd.f32 %v2751_v7, %v6241_v11  ;;  %v2864_v11 = vpop.f32.mrf.mxu1 }
 0x1aa   :  { %v3186_v31 = vrot.slane %v3023_v43, 2  ;;  %v3218_v20 = vrot.slane %v3023_v43, 4  ;;  %v2992_v34 = vrot.slane %v2960_v23, 4  ;;  %v2893_v16 = vmax.f32 %v2853_v9, 0.0 }
 0x1ab   :  { %v2894_v63 = vmax.f32 %v2855_v61, 0.0  ;;  %v2895_v17 = vmax.f32 %v2859_v60, 0.0  ;;  %v2861_v2 = vadd.f32 %v2860_v6, %v2748_v39  ;;  %v2863_v55 = vadd.f32 %v2862_v50, %v2750_v36 }
 0x1ac   :  { %v3188_v51 = vsel %vm3187_vm12, %v3186_v31, %v3185_v33  ;;  %v3219_v62 = vsel %vm3187_vm12, %v3218_v20, %v3217_v27  ;;  %v3024_v3 = vmax.f32 %v2960_v23, %v2992_v34  ;;  %v3055_v35 = vrot.slane %v2893_v16, 1 }
 0x1ad   :  { %v3056_v1 = vrot.slane %v2894_v63, 1  ;;  %v2929_v18 = vrot.slane %v2895_v17, 1  ;;  %v2896_v53 = vmax.f32 %v2861_v2, 0.0  ;;  %v2897_v25 = vmax.f32 %v2863_v55, 0.0 }
 0x1ae   :  { %v3202_v56 = vrot.slane %v3024_v3, 2  ;;  %v3232_v45 = vrot.slane %v3024_v3, 4  ;;  %v3087_v5 = vmax.f32 %v2893_v16, %v3055_v35  ;;  %v2865_v52 = vadd.f32 %v2864_v11, %v2752_v19 }
 0x1af   :  { %v3088_v46 = vmax.f32 %v2894_v63, %v3056_v1  ;;  %v2961_v38 = vmax.f32 %v2895_v17, %v2929_v18  ;;  %v2930_v13 = vrot.slane %v2896_v53, 1  ;;  %v3057_v41 = vrot.slane %v2897_v25, 1  ;;  %v4651_v18 = vld [vmem:[%s6439_s3 + $0x138] sm:$0xff]  }
 0x1b0   :  { %v3119_v32 = vrot.slane %v3087_v5, 4  ;;  %v2898_v33 = vmax.f32 %v2865_v52, 0.0  ;;  %v3199_v27 = vsel %vm3181_vm10, %v3198_v4, %v6205_v22  ;;  %v3229_v12 = vsel %vm3181_vm10, %v3228_v57, %v6209_v44 }
 0x1b1   :  { %v3120_v58 = vrot.slane %v3088_v46, 4  ;;  %v2993_v10 = vrot.slane %v2961_v38, 4  ;;  %v2962_v15 = vmax.f32 %v2896_v53, %v2930_v13  ;;  %v3089_v6 = vmax.f32 %v2897_v25, %v3057_v41  ;;  %v4653_v53 = vld [vmem:[%s6439_s3 + $0x170] sm:$0xff]  }
 0x1b2   :  { %v3151_v47 = vmax.f32 %v3087_v5, %v3119_v32  ;;  %v3058_v30 = vrot.slane %v2898_v33, 1  ;;  %v3201_v42 = vsel %vm3184_vm11, %v3200_v21, %v3199_v27  ;;  %v3231_v26 = vsel %vm3184_vm11, %v3230_v24, %v3229_v12  ;;  %v4654_v5 = vld [vmem:[%s6439_s3 + $0x1f0] sm:$0xff]   ;;  %v4657_v32 = vld [vmem:[%s6439_s3 + $0x168] sm:$0xff]  }
 0x1b3   :  { %v3152_v7 = vmax.f32 %v3088_v46, %v3120_v58  ;;  %v3025_v43 = vmax.f32 %v2961_v38, %v2993_v10  ;;  %v2994_v22 = vrot.slane %v2962_v15, 4  ;;  %v3121_v4 = vrot.slane %v3089_v6, 4  ;;  %v4656_v13 = vld [vmem:[%s6439_s3 + $0x1b0] sm:$0xff]   ;;  %v4659_v27 = vld [vmem:[%s6439_s3 + $0x128] sm:$0xff]   ;;  %v4661_v58 = vld [vmem:[%s6439_s3 + $0x160] sm:$0xff]  }
 0x1b4   :  { %v3306_v59 = vrot.slane %v6265_v37, 5  ;;  %v3264_v23 = vrot.slane %v3151_v47, 2  ;;  %v3090_v44 = vmax.f32 %v2898_v33, %v3058_v30  ;;  %v3203_v57 = vsel %vm3187_vm12, %v3202_v56, %v3201_v42  ;;  %v4652_v37 = vld [vmem:[%s6439_s3 + $0x1b8] sm:$0xff]   ;;  %v4658_v33 = vld [vmem:[%s6439_s3 + $0x1e8] sm:$0xff]   ;;  %v4662_v10 = vld [vmem:[%s6439_s3 + $0x1e0] sm:$0xff]  }
 0x1b5   :  { %v3294_v9 = vrot.slane %v3151_v47, 4  ;;  %v3278_v61 = vrot.slane %v3152_v7, 2  ;;  %v3189_v60 = vrot.slane %v3025_v43, 1  ;;  %v3220_v39 = vrot.slane %v3025_v43, 3  ;;  %v4660_v12 = vld [vmem:[%s6439_s3 + $0x1a8] sm:$0xff]   ;;  %v4665_v47 = vld [vmem:[%s6439_s3 + $0x158] sm:$0xff]  }
 0x1b6   :  { %v3026_v36 = vmax.f32 %v2962_v15, %v2994_v22  ;;  %v3153_v49 = vmax.f32 %v3089_v6, %v3121_v4  ;;  %v3122_v50 = vrot.slane %v3090_v44, 4  ;;  %v3233_v21 = vsel %vm3187_vm12, %v3232_v45, %v3231_v26  ;;  %v4663_v15 = vld [vmem:[%s6439_s3 + $0x120] sm:$0xff]   ;;  %v4666_v30 = vld [vmem:[%s6439_s3 + $0x1d8] sm:$0xff]   ;;  %v4670_v43 = vld [vmem:[%s6439_s3 + $0x1d0] sm:$0xff]  }
 0x1b7   :  { %v3191_v24 = vsel %vm3190_vm13, %v3189_v60, %v3188_v51  ;;  %v3221_v19 = vsel %vm3190_vm13, %v3220_v39, %v3219_v62  ;;  %v3275_v31 = vsel %vm3181_vm10, %v3274_v40, %v6222_v28  ;;  %v3305_v20 = vsel %vm3181_vm10, %v3304_v29, %v6225_v8  ;;  %v4664_v6 = vld [vmem:[%s6439_s3 + $0x1a0] sm:$0xff]   ;;  %v4667_v42 = vld [vmem:[%s6439_s3 + $0x118] sm:$0xff]   ;;  %v4671_v22 = vld [vmem:[%s6439_s3 + $0x110] sm:$0xff]  }
 0x1b8   :  { %v3308_v34 = vrot.slane %v3152_v7, 4  ;;  %v3314_v16 = vpack.c.bf16 %v3191_v24, %v3191_v24  ;;  %v3204_v63 = vrot.slane %v3026_v36, 1  ;;  %v3234_v17 = vrot.slane %v3026_v36, 3  ;;  %v4668_v26 = vld [vmem:[%s6439_s3 + $0x198] sm:$0xff]   ;;  %v4669_v7 = vld [vmem:[%s6439_s3 + $0x150] sm:$0xff]   ;;  %v4679_v60 = vld [vmem:[%s6439_s3 + $0x100] sm:$0xff]  }
 0x1b9   :  { %v3266_v2 = vrot.slane %v3153_v49, 1  ;;  %v3296_v55 = vrot.slane %v3153_v49, 3  ;;  %v3154_v3 = vmax.f32 %v3090_v44, %v3122_v50  ;;  %v3277_v51 = vsel %vm3184_vm11, %v3276_v48, %v3275_v31  ;;  %v4672_v4 = vld [vmem:[%s6439_s3 + $0x190] sm:$0xff]   ;;  %v4675_v44 = vld [vmem:[%s6439_s3 + $0x108] sm:$0xff]   ;;  %v4680_v39 = vld [vmem:[%s6439_s3 + $0x180] sm:$0xff]  }
 0x1ba   :  { %v3205_v62 = vsel %vm3190_vm13, %v3204_v63, %v3203_v57  ;;  %v3235_v28 = vsel %vm3190_vm13, %v3234_v17, %v3233_v21  ;;  %v3279_v40 = vsel %vm3187_vm12, %v3278_v61, %v3277_v51  ;;  %v3307_v0 = vsel %vm3184_vm11, %v3306_v59, %v3305_v20  ;;  %v4673_v59 = vld [vmem:[%s6439_s3 + $0x148] sm:$0xff]   ;;  %v4678_v61 = vld [vmem:[%s6439_s3 + $0x1c0] sm:$0xff]  }
 0x1bb   :  { %v3280_v8 = vrot.slane %v3154_v3, 1  ;;  %v3310_v29 = vrot.slane %v3154_v3, 3  ;;  %v3315_v35 = vpack.c.bf16 %v3205_v62, %v3205_v62  ;;  %v3317_v1 = vpack.c.bf16 %v3235_v28, %v3235_v28  ;;  %v4676_v57 = vld [vmem:[%s6439_s3 + $0x188] sm:$0xff]   ;;  %v4682_v24 = vld [vmem:[%s6441_s5] sm:$0xff]  }
 0x1bc   :  { %v3316_v48 = vpack.c.bf16 %v3221_v19, %v3221_v19  ;;  %v3309_v25 = vsel %vm3187_vm12, %v3308_v34, %v3307_v0  ;;  %v3265_v11 = vsel %vm3187_vm12, %v3264_v23, %v6274_v54  ;;  %v3295_v56 = vsel %vm3187_vm12, %v3294_v9, %v6277_v14  ;;  %v4655_v14 = vld [vmem:[%s6439_s3 + $0x130] sm:$0xff]   ;;  %v4674_v23 = vld [vmem:[%s6439_s3 + $0x1c8] sm:$0xff]   ;;  %v4677_v9 = vld [vmem:[%s6439_s3 + $0x140] sm:$0xff]  }
 0x1bd   :  { %3873 = vmatprep.mubr.bf16.mxu0 %v3315_v35  ;;  %3913 = vmatprep.mubr.bf16.mxu1 %v3317_v1  ;;  %v3281_v45 = vsel %vm3190_vm13, %v3280_v8, %v3279_v40  ;;  %v3311_v52 = vsel %vm3190_vm13, %v3310_v29, %v3309_v25  ;;  %v6338_v46 = vsel %vm3190_vm13, %v3266_v2, %v3265_v11  ;;  %v4681_v50 = vld [vmem:[%s6441_s5 + $0x8] sm:$0xff]   ;;  %v4717_v21 = vmov 0.0   ;;  %v4253_v3 = vld [vmem:[%s6440_s4] ss:$0 sm:$0xff] }
 0x1be   :  { %3874 = vmatmul.mubr.bf16.vlgmr.msra.gmra.mxu0 %v3314_v16  ;;  %3914 = vmatmul.mubr.bf16.vlgmr.msra.gmra.mxu1 %v3316_v48  ;;  %v3319_v38 = vpack.c.bf16 %v3281_v45, %v3281_v45  ;;  %v3321_v54 = vpack.c.bf16 %v3311_v52, %v3311_v52  ;;  %v3297_v41 = vsel %vm3190_vm13, %v3296_v55, %v3295_v56 }
 0x1bf   :  { %4367 = vmatpush3.bf16.msra.mxu0 %v4651_v18  ;;  %4389 = vmatpush3.bf16.msra.mxu1 %v4652_v37  ;;  %v3318_v36 = vpack.c.bf16 %v6338_v46, %v6338_v46  ;;  %v3320_v49 = vpack.c.bf16 %v3297_v41, %v3297_v41 }
 0x1c0   :  { %4368 = vmatprep.subr.bf16.mxu0 %v4653_v53  ;;  %3953 = vmatprep.mubr.bf16.mxu0 %v3319_v38 }
 0x1c1   :  { %4390 = vmatprep.subr.bf16.mxu1 %v4654_v5  ;;  %3993 = vmatprep.mubr.bf16.mxu1 %v3321_v54  ;;  %v4318_v5 = vld [vmem:[%s6442_s6] ss:$0 sm:$0xff] }
 0x1c3   :  { %4369 = vmatpush3.bf16.msra.mxu0 %v4655_v14  ;;  %4391 = vmatpush3.bf16.msra.mxu1 %v4656_v13 }
 0x1c4   :  { %4370 = vmatprep.subr.bf16.mxu0 %v4657_v32  ;;  %4392 = vmatprep.subr.bf16.mxu1 %v4658_v33 }
 0x1c7   :  { %4371 = vmatpush3.bf16.msra.mxu0 %v4659_v27  ;;  %4393 = vmatpush3.bf16.msra.mxu1 %v4660_v12 }
 0x1c8   :  { %4372 = vmatprep.subr.bf16.mxu0 %v4661_v58  ;;  %4394 = vmatprep.subr.bf16.mxu1 %v4662_v10 }
 0x1cb   :  { %4373 = vmatpush3.bf16.msra.mxu0 %v4663_v15  ;;  %4395 = vmatpush3.bf16.msra.mxu1 %v4664_v6 }
 0x1cc   :  { %4374 = vmatprep.subr.bf16.mxu0 %v4665_v47  ;;  %4396 = vmatprep.subr.bf16.mxu1 %v4666_v30 }
 0x1cf   :  { %4375 = vmatpush3.bf16.msra.mxu0 %v4667_v42  ;;  %4397 = vmatpush3.bf16.msra.mxu1 %v4668_v26 }
 0x1d0   :  { %4376 = vmatprep.subr.bf16.mxu0 %v4669_v7  ;;  %4398 = vmatprep.subr.bf16.mxu1 %v4670_v43 }
 0x1d3   :  { %4377 = vmatpush3.bf16.msra.mxu0 %v4671_v22  ;;  %4399 = vmatpush3.bf16.msra.mxu1 %v4672_v4 }
 0x1d4   :  { %4378 = vmatprep.subr.bf16.mxu0 %v4673_v59  ;;  %4400 = vmatprep.subr.bf16.mxu1 %v4674_v23 }
 0x1d7   :  { %4379 = vmatpush3.bf16.msra.mxu0 %v4675_v44  ;;  %4401 = vmatpush3.bf16.msra.mxu1 %v4676_v57 }
 0x1d8   :  { %4380 = vmatprep.subr.bf16.mxu0 %v4677_v9  ;;  %4402 = vmatprep.subr.bf16.mxu1 %v4678_v61 }
 0x1db   :  { %4381 = vmatpush3.bf16.msra.mxu0 %v4679_v60  ;;  %4403 = vmatpush3.bf16.msra.mxu1 %v4680_v39 }
 0x1dc   :  { %4413 = vmatprep.subr.bf16.mxu0 %v4717_v21 }
 0x1de   :  { %3954 = vmatmul.mubr.bf16.vlgmr.msra.gmra.mxu0 %v3318_v36  ;;  %3994 = vmatmul.mubr.bf16.vlgmr.msra.gmra.mxu1 %v3320_v49 }
 0x1df   :  { %4417 = vmatprep.mubr.msk.bf16.mxu0 %vm4718_vm14, %v4717_v21  ;;  %4414 = vmatpush3.bf16.msra.mxu0 %v4681_v50 }
 0x1e0   :  { %4415 = vmatprep.subr.bf16.mxu0 %v4717_v21 }
 0x1e3   :  { %4416 = vmatpush3.bf16.msra.mxu0 %v4682_v24 }
 0x27e   :  { %v4338_v19 = vpop.f32.mrf.mxu0  ;;  %v4360_v31 = vpop.f32.mrf.mxu1 }
 0x280   :  { %v4339_v20 = vpop.f32.mrf.mxu0  ;;  %v4361_v34 = vpop.f32.mrf.mxu1 }
 0x281   :  { %v4340_v55 = vadd.f32 %v4339_v20, %v4338_v19  ;;  %v4362_v40 = vadd.f32 %v4361_v34, %v4360_v31 }
 0x282   :  { %v4341_v16 = vpop.f32.mrf.mxu0  ;;  %v4363_v63 = vpop.f32.mrf.mxu1 }
 0x283   :  { %v3876_v51 = vadd.f32 %v4340_v55, %v4253_v3 }
 0x284   :  { %v4342_v17 = vpop.f32.mrf.mxu0  ;;  %v4364_v2 = vpop.f32.mrf.mxu1 }
 0x285   :  { %v3916_v29 = vadd.f32 %v4362_v40, %v3876_v51 }
 0x29e   :  { %v4382_v62 = vpop.f32.mrf.mxu0  ;;  %v4404_v28 = vpop.f32.mrf.mxu1 }
 0x2a0   :  { %v4383_v0 = vpop.f32.mrf.mxu0  ;;  %v4405_v8 = vpop.f32.mrf.mxu1 }
 0x2a1   :  { %v4384_v35 = vadd.f32 %v4383_v0, %v4382_v62  ;;  %v4406_v48 = vadd.f32 %v4405_v8, %v4404_v28 }
 0x2a2   :  { %v4385_v1 = vpop.f32.mrf.mxu0  ;;  %v4407_v18 = vpop.f32.mrf.mxu1 }
 0x2a3   :  { %v3956_v37 = vadd.f32 %v4384_v35, %v3916_v29 }
 0x2a4   :  { %v4386_v53 = vpop.f32.mrf.mxu0  ;;  %v4408_v25 = vpop.f32.mrf.mxu1 }
 0x2a5   :  { %v3996_v11 = vadd.f32 %v4406_v48, %v3956_v37 }
 0x2a7   :  { %v4001_v56 = vmax.f32 %v3996_v11, 0.0 }
 0x2a9   :  { %v4002_v45 = vpack.c.bf16 %v4001_v56, %v4001_v56 }
 0x2ab   :  { %4418 = vmatmul.mubr.msk.bf16.vlgmr.msra.gmra.mxu0 %vm4026_vm15, %v4002_v45 }
 0x36b   :  { %v4064_v52 = vpop.f32.mrf.mxu0 }
 0x36c   :  { %v4065_v46 = vadd.f32 %v4318_v5, %v4064_v52 }
 0x36d   :  { %v4419_v38 = vpop.f32.mrf.mxu0 }
 0x36e   :  { %4070 = vst [vmem:[#allocation2] sm:$0xff] %v4065_v46 }
 0x36f   :  { %v4067_v54 = vpop.f32.mrf.mxu0 }
 0x370   :  { %4705 = shalt.err (!%p4702_p4)
}
 0x371   :  { %4080 = dma.vmem_to_hbm [thread:$0]  %s4078_s1, 128, %s6443_s7, [#allocation3]   ;;  %v4420_v14 = vpop.f32.mrf.mxu0 }
 0x372   :  { %4714 = dma.done.wait [#allocation3], 128  }
 0x373   :  { %4715 = vsyncadd [#allocation3], 4294967168 }
 0x374   :  { %4084 = vsyncpa [#allocation3], 1 }

</bundles_post_ra>
